<compile_context>
chip_gen: v6e
topology: v6e:2x2x1
jax: 0.10.0
libtpu: 0.0.40
codegen_flags: <defaults>
</compile_context>

<pallas_src>
import functools
import math

import jax
import jax.numpy as jnp
import numpy as np
from jax.experimental import pallas as pl
from jax.experimental.pallas import tpu as pltpu

LN_EPS = 1e-5  # PyTorch nn.LayerNorm default


def _round_up(n, m):
    return ((n + m - 1) // m) * m


# ----------------------------- Pallas kernel ------------------------------ #
def _iqn_kernel(
    x_ref,      # (TB, D)       concat(state, action), one row per batch element
    tau_ref,    # (TB, T)       quantile samples, lane-dense
    pis_ref,    # (1, n_cos)    pi * [1..n_cos]
    wh_ref,     # (D, L)        head linear weight (pre-transposed)
    bh_ref,     # (1, L)
    g1_ref,     # (1, L)        head LayerNorm gamma
    be1_ref,    # (1, L)        head LayerNorm beta
    wc_ref,     # (n_cos, L)    cos_embedding weight
    bc_ref,     # (1, L)
    w1_ref,     # (L, L)        ff_1 linear weight
    b1_ref,     # (1, L)
    g2_ref,     # (1, L)        ff_1 LayerNorm gamma
    be2_ref,    # (1, L)        ff_1 LayerNorm beta
    w2_ref,     # (1, L)        ff_2 weight as a row (VPU+XLU reduction, no MXU)
    b2_ref,     # (1, 1)        ff_2 bias, SMEM scalar
    out_ref,    # (TB, T)       quantiles, lane-dense
    *,
    use_bf16: bool,
):
    TB = x_ref.shape[0]
    T = tau_ref.shape[1]

    def mxu(a, w):
        if use_bf16:  # v6e/v7x fast path; LayerNorm below renormalizes
            a = a.astype(jnp.bfloat16)
            w = w.astype(jnp.bfloat16)
        return jnp.dot(a, w, preferred_element_type=jnp.float32)

    def layernorm(v, gamma, beta):
        mu = jnp.mean(v, axis=-1, keepdims=True)
        c = v - mu
        var = jnp.mean(c * c, axis=-1, keepdims=True)
        return c * jax.lax.rsqrt(var + LN_EPS) * gamma + beta

    # ---- head: Linear -> LayerNorm -> ReLU (once per BATCH row) ----
    x = x_ref[...]                                           # (TB, D)
    h = mxu(x, wh_ref[...]) + bh_ref[...]                    # (TB, L)
    h = jnp.maximum(layernorm(h, g1_ref[...], be1_ref[...]), 0.0)

    # ---- cosine embedding: cos(tau * pi_k) -> Linear -> ReLU ----
    # Expand taus to (T*TB, 1) with t-major / b-minor row order using lane
    # slices + sublane concat (layout-safe on TPU).
    taus = tau_ref[...]                                      # (TB, T)
    tau_exp = jnp.concatenate([taus[:, t:t + 1] for t in range(T)], axis=0)
    cosv = jnp.cos(tau_exp * pis_ref[...])                   # (T*TB, n_cos)
    ce = mxu(cosv, wc_ref[...]) + bc_ref[...]                # (T*TB, L)
    ce = jnp.maximum(ce, 0.0)

    # ---- elementwise mix: broadcast h across the tau dimension ----
    h_exp = jnp.concatenate([h] * T, axis=0)                 # (T*TB, L)
    z = h_exp * ce

    # ---- ff_1: Linear -> LayerNorm -> ReLU ----
    z = mxu(z, w1_ref[...]) + b1_ref[...]
    z = jnp.maximum(layernorm(z, g2_ref[...], be2_ref[...]), 0.0)

    # ---- ff_2: Linear(L -> 1) as VPU multiply + lane reduction ----
    q = jnp.sum(z * w2_ref[...], axis=-1, keepdims=True) + b2_ref[0, 0]  # (T*TB, 1)

    # Reassemble lane-dense (TB, T) output: column t <- rows [t*TB, (t+1)*TB).
    out_ref[...] = jnp.concatenate(
        [q[t * TB:(t + 1) * TB, :] for t in range(T)], axis=-1)


# ------------------------------ JAX wrapper ------------------------------- #
def init_iqn_params(key, state_size, action_size, layer_size, n_cos):
    """Deterministic synthetic parameters matching the PyTorch module shapes.

    Weights are stored pre-transposed as (in_features, out_features) so the
    kernel computes y = x @ W + b.
    """
    ks = jax.random.split(key, 4)
    s2 = math.sqrt(2.0)
    params = dict(
        # head[0]: Linear(state+action -> layer)
        wh=jax.random.normal(ks[0], (state_size + action_size, layer_size), jnp.float32)
        * (s2 / math.sqrt(state_size + action_size)),
        bh=jnp.zeros((1, layer_size), jnp.float32),
        # head[1]: LayerNorm(layer)
        g1=jnp.ones((1, layer_size), jnp.float32),
        be1=jnp.zeros((1, layer_size), jnp.float32),
        # cos_embedding: Linear(n_cos -> layer)
        wc=jax.random.normal(ks[1], (n_cos, layer_size), jnp.float32)
        * (s2 / math.sqrt(n_cos)),
        bc=jnp.zeros((1, layer_size), jnp.float32),
        # ff_1[0]: Linear(layer -> layer)
        w1=jax.random.normal(ks[2], (layer_size, layer_size), jnp.float32)
        * (s2 / math.sqrt(layer_size)),
        b1=jnp.zeros((1, layer_size), jnp.float32),
        # ff_1[1]: LayerNorm(layer)
        g2=jnp.ones((1, layer_size), jnp.float32),
        be2=jnp.zeros((1, layer_size), jnp.float32),
        # ff_2: Linear(layer -> 1), uniform(-0.003, 0.003)
        w2=jax.random.uniform(ks[3], (layer_size, 1), jnp.float32, -0.003, 0.003),
        b2=jnp.zeros((1, 1), jnp.float32),
    )
    return params


@functools.partial(jax.jit, static_argnames=("num_tau", "n_cos", "use_bf16"))
def iqn_forward(params, state, action, tau_key, num_tau=8, n_cos=64, use_bf16=False):
    """Pallas IQN forward.

    Args:
      state:  (B, state_size) float32
      action: (B, action_size) float32
    Returns:
      quantiles: (B, num_tau, 1), taus: (B, num_tau, 1)
    """
    B = state.shape[0]
    D = state.shape[1] + action.shape[1]
    L = params["wh"].shape[1]

    # taus ~ U[0,1): same distribution/shape as torch.rand(B, num_tau, 1)
    taus = jax.random.uniform(tau_key, (B, num_tau, 1), jnp.float32)

    # Batch-row tiling: TB rows per grid step (multiple of 8), batch padded.
    TB = min(128, _round_up(B, 8))
    B_pad = _round_up(B, TB)
    nb = B_pad // TB
    pad = B_pad - B

    x_cat = jnp.concatenate([state, action], axis=1)           # (B, D)
    x_p = jnp.pad(x_cat, ((0, pad), (0, 0)))                   # (B_pad, D)
    tau_ld = jnp.pad(taus[..., 0], ((0, pad), (0, 0)),
                     constant_values=0.5)                      # (B_pad, T) lane-dense

    pis = (np.pi * jnp.arange(1, n_cos + 1, dtype=jnp.float32)).reshape(1, n_cos)
    w2_row = params["w2"].reshape(1, L)                        # ff_2 weight as a row
    b2 = params["b2"].reshape(1, 1)

    kernel = functools.partial(_iqn_kernel, use_bf16=use_bf16)

    def tiled(shape):      # row-tiled over the batch grid axis
        return pl.BlockSpec(shape, lambda i: (i, 0))

    def resident(shape):   # weights / constants stay resident across the grid
        return pl.BlockSpec(shape, lambda i: (0, 0))

    in_specs = [
        tiled((TB, D)),                 # x
        tiled((TB, num_tau)),           # taus (lane-dense)
        resident((1, n_cos)),           # pis
        resident((D, L)),               # wh
        resident((1, L)),               # bh
        resident((1, L)),               # g1
        resident((1, L)),               # be1
        resident((n_cos, L)),           # wc
        resident((1, L)),               # bc
        resident((L, L)),               # w1
        resident((1, L)),               # b1
        resident((1, L)),               # g2
        resident((1, L)),               # be2
        resident((1, L)),               # w2 row
        pl.BlockSpec(memory_space=pltpu.MemorySpace.SMEM),   # b2 scalar in SMEM
    ]

    out = pl.pallas_call(
        kernel,
        out_shape=jax.ShapeDtypeStruct((B_pad, num_tau), jnp.float32),
        grid=(nb,),
        in_specs=in_specs,
        out_specs=pl.BlockSpec((TB, num_tau), lambda i: (i, 0)),
        compiler_params=pltpu.CompilerParams(
            dimension_semantics=("parallel",),
            vmem_limit_bytes=32 * 1024 * 1024,
        ),
    )(x_p, tau_ld, pis,
      params["wh"], params["bh"], params["g1"], params["be1"],
      params["wc"], params["bc"],
      params["w1"], params["b1"], params["g2"], params["be2"],
      w2_row, b2)

    quantiles = out[:B].reshape(B, num_tau, 1)
    return quantiles, taus


# Pure-JAX reference (mirrors the PyTorch forward) for a correctness check.
def iqn_forward_ref(params, state, action, taus, n_cos=64):
    B, num_tau = taus.shape[0], taus.shape[1]
    pis = (np.pi * jnp.arange(1, n_cos + 1, dtype=jnp.float32)).reshape(1, 1, n_cos)

    def ln(x, g, b):
        mu = x.mean(-1, keepdims=True)
        var = ((x - mu) ** 2).mean(-1, keepdims=True)
        return (x - mu) / jnp.sqrt(var + LN_EPS) * g + b

    x = jnp.concatenate([state, action], axis=1)
    h = jax.nn.relu(ln(x @ params["wh"] + params["bh"], params["g1"], params["be1"]))
    cos = jnp.cos(taus * pis).reshape(B * num_tau, n_cos)
    ce = jax.nn.relu(cos @ params["wc"] + params["bc"]).reshape(B, num_tau, -1)
    z = (h[:, None, :] * ce).reshape(B * num_tau, -1)
    z = jax.nn.relu(ln(z @ params["w1"] + params["b1"], params["g2"], params["be2"]))
    out = z @ params["w2"] + params["b2"]
    return out.reshape(B, num_tau, 1)


if __name__ == "__main__":
    # Small, IQN-consistent shapes.
    B, STATE, ACTION, LAYER, N_COS, NUM_TAU = 2, 16, 4, 32, 64, 8

    key = jax.random.PRNGKey(0)
    k_param, k_state, k_action, k_tau = jax.random.split(key, 4)

    params = init_iqn_params(k_param, STATE, ACTION, LAYER, N_COS)
    state = jax.random.normal(k_state, (B, STATE), jnp.float32)
    action = jax.random.normal(k_action, (B, ACTION), jnp.float32)

    quantiles, taus = iqn_forward(
        params, state, action, k_tau, num_tau=NUM_TAU, n_cos=N_COS
    )
    quantiles = jax.block_until_ready(quantiles)
    taus = jax.block_until_ready(taus)

    assert quantiles.shape == (B, NUM_TAU, 1)
    assert taus.shape == (B, NUM_TAU, 1)

    ref = iqn_forward_ref(params, state, action, taus, n_cos=N_COS)
    np.testing.assert_allclose(np.asarray(quantiles), np.asarray(ref),
                               rtol=1e-4, atol=1e-5)

    print("KERNEL_OK")
</pallas_src>

<mosaic_0001>
module attributes {stable_mosaic.version = 11 : i64} {
  func.func @_iqn_kernel(%arg0: i32, %arg1: memref<8x20xf32, #tpu.memory_space<vmem>>, %arg2: memref<8x8xf32, #tpu.memory_space<vmem>>, %arg3: memref<1x64xf32, #tpu.memory_space<vmem>>, %arg4: memref<20x32xf32, #tpu.memory_space<vmem>>, %arg5: memref<1x32xf32, #tpu.memory_space<vmem>>, %arg6: memref<1x32xf32, #tpu.memory_space<vmem>>, %arg7: memref<1x32xf32, #tpu.memory_space<vmem>>, %arg8: memref<64x32xf32, #tpu.memory_space<vmem>>, %arg9: memref<1x32xf32, #tpu.memory_space<vmem>>, %arg10: memref<32x32xf32, #tpu.memory_space<vmem>>, %arg11: memref<1x32xf32, #tpu.memory_space<vmem>>, %arg12: memref<1x32xf32, #tpu.memory_space<vmem>>, %arg13: memref<1x32xf32, #tpu.memory_space<vmem>>, %arg14: memref<1x32xf32, #tpu.memory_space<vmem>>, %arg15: memref<1x1xf32, #tpu.memory_space<smem>>, %arg16: memref<8x8xf32, #tpu.memory_space<vmem>>) attributes {dimension_semantics = [#tpu.dimension_semantics<parallel>], iteration_bounds = array<i64: 1>, scalar_prefetch = 0 : i64, scratch_operands = 0 : i64, tpu.core_type = #tpu.core_type<tc>, window_params = [{transform_indices = @transform_0, window_bounds = array<i64: 8, 20>}, {transform_indices = @transform_1, window_bounds = array<i64: 8, 8>}, {pipeline_mode = #tpu.pipeline_mode<synchronous>, transform_indices = @transform_2, window_bounds = array<i64: 1, 64>}, {pipeline_mode = #tpu.pipeline_mode<synchronous>, transform_indices = @transform_3, window_bounds = array<i64: 20, 32>}, {pipeline_mode = #tpu.pipeline_mode<synchronous>, transform_indices = @transform_4, window_bounds = array<i64: 1, 32>}, {pipeline_mode = #tpu.pipeline_mode<synchronous>, transform_indices = @transform_5, window_bounds = array<i64: 1, 32>}, {pipeline_mode = #tpu.pipeline_mode<synchronous>, transform_indices = @transform_6, window_bounds = array<i64: 1, 32>}, {pipeline_mode = #tpu.pipeline_mode<synchronous>, transform_indices = @transform_7, window_bounds = array<i64: 64, 32>}, {pipeline_mode = #tpu.pipeline_mode<synchronous>, transform_indices = @transform_8, window_bounds = array<i64: 1, 32>}, {pipeline_mode = #tpu.pipeline_mode<synchronous>, transform_indices = @transform_9, window_bounds = array<i64: 32, 32>}, {pipeline_mode = #tpu.pipeline_mode<synchronous>, transform_indices = @transform_10, window_bounds = array<i64: 1, 32>}, {pipeline_mode = #tpu.pipeline_mode<synchronous>, transform_indices = @transform_11, window_bounds = array<i64: 1, 32>}, {pipeline_mode = #tpu.pipeline_mode<synchronous>, transform_indices = @transform_12, window_bounds = array<i64: 1, 32>}, {pipeline_mode = #tpu.pipeline_mode<synchronous>, transform_indices = @transform_13, window_bounds = array<i64: 1, 32>}, {transform_indices = @transform_14, window_bounds = array<i64: 1, 1>}, {transform_indices = @transform_15, window_bounds = array<i64: 8, 8>}]} {
    %c0 = arith.constant 0 : index
    %c0_0 = arith.constant 0 : index
    %0 = vector.load %arg1[%c0, %c0_0] : memref<8x20xf32, #tpu.memory_space<vmem>>, vector<8x20xf32>
    %c0_1 = arith.constant 0 : index
    %c0_2 = arith.constant 0 : index
    %1 = vector.load %arg4[%c0_1, %c0_2] : memref<20x32xf32, #tpu.memory_space<vmem>>, vector<20x32xf32>
    %cst = arith.constant dense<0.000000e+00> : vector<8x32xf32>
    %2 = tpu.matmul %0, %1, %cst {dimension_numbers = #tpu.dot_dimension_numbers<[1], [0], [0], [1], [0, 0, 1, 1], [], []>} : vector<8x20xf32>, vector<20x32xf32>, vector<8x32xf32> -> vector<8x32xf32>
    %c0_3 = arith.constant 0 : index
    %c0_4 = arith.constant 0 : index
    %3 = vector.load %arg5[%c0_3, %c0_4] : memref<1x32xf32, #tpu.memory_space<vmem>>, vector<1x32xf32>
    %4 = vector.broadcast %3 : vector<1x32xf32> to vector<8x32xf32>
    %5 = arith.addf %2, %4 : vector<8x32xf32>
    %c0_5 = arith.constant 0 : index
    %c0_6 = arith.constant 0 : index
    %6 = vector.load %arg6[%c0_5, %c0_6] : memref<1x32xf32, #tpu.memory_space<vmem>>, vector<1x32xf32>
    %c0_7 = arith.constant 0 : index
    %c0_8 = arith.constant 0 : index
    %7 = vector.load %arg7[%c0_7, %c0_8] : memref<1x32xf32, #tpu.memory_space<vmem>>, vector<1x32xf32>
    %cst_9 = arith.constant dense<0.000000e+00> : vector<8xf32>
    %8 = vector.multi_reduction <add>, %5, %cst_9 [1] : vector<8x32xf32> to vector<8xf32>
    %9 = vector.shape_cast %8 : vector<8xf32> to vector<8x1xf32>
    %cst_10 = arith.constant 3.200000e+01 : f32
    %10 = vector.broadcast %cst_10 : f32 to vector<8x1xf32>
    %11 = arith.divf %9, %10 : vector<8x1xf32>
    %12 = vector.broadcast %11 : vector<8x1xf32> to vector<8x32xf32>
    %13 = arith.subf %5, %12 : vector<8x32xf32>
    %14 = arith.mulf %13, %13 : vector<8x32xf32>
    %cst_11 = arith.constant dense<0.000000e+00> : vector<8xf32>
    %15 = vector.multi_reduction <add>, %14, %cst_11 [1] : vector<8x32xf32> to vector<8xf32>
    %16 = vector.shape_cast %15 : vector<8xf32> to vector<8x1xf32>
    %cst_12 = arith.constant 3.200000e+01 : f32
    %17 = vector.broadcast %cst_12 : f32 to vector<8x1xf32>
    %18 = arith.divf %16, %17 : vector<8x1xf32>
    %cst_13 = arith.constant 9.99999974E-6 : f32
    %19 = vector.broadcast %cst_13 : f32 to vector<8x1xf32>
    %20 = arith.addf %18, %19 : vector<8x1xf32>
    %21 = math.rsqrt %20 : vector<8x1xf32>
    %22 = vector.broadcast %21 : vector<8x1xf32> to vector<8x32xf32>
    %23 = arith.mulf %13, %22 : vector<8x32xf32>
    %24 = vector.broadcast %6 : vector<1x32xf32> to vector<8x32xf32>
    %25 = arith.mulf %23, %24 : vector<8x32xf32>
    %26 = vector.broadcast %7 : vector<1x32xf32> to vector<8x32xf32>
    %27 = arith.addf %25, %26 : vector<8x32xf32>
    %cst_14 = arith.constant 0.000000e+00 : f32
    %28 = vector.broadcast %cst_14 : f32 to vector<8x32xf32>
    %29 = arith.maximumf %27, %28 : vector<8x32xf32>
    %c0_15 = arith.constant 0 : index
    %c0_16 = arith.constant 0 : index
    %30 = vector.load %arg2[%c0_15, %c0_16] : memref<8x8xf32, #tpu.memory_space<vmem>>, vector<8x8xf32>
    %31 = vector.extract_strided_slice %30 {offsets = [0, 0], sizes = [8, 1], strides = [1, 1]} : vector<8x8xf32> to vector<8x1xf32>
    %32 = vector.extract_strided_slice %30 {offsets = [0, 1], sizes = [8, 1], strides = [1, 1]} : vector<8x8xf32> to vector<8x1xf32>
    %33 = vector.extract_strided_slice %30 {offsets = [0, 2], sizes = [8, 1], strides = [1, 1]} : vector<8x8xf32> to vector<8x1xf32>
    %34 = vector.extract_strided_slice %30 {offsets = [0, 3], sizes = [8, 1], strides = [1, 1]} : vector<8x8xf32> to vector<8x1xf32>
    %35 = vector.extract_strided_slice %30 {offsets = [0, 4], sizes = [8, 1], strides = [1, 1]} : vector<8x8xf32> to vector<8x1xf32>
    %36 = vector.extract_strided_slice %30 {offsets = [0, 5], sizes = [8, 1], strides = [1, 1]} : vector<8x8xf32> to vector<8x1xf32>
    %37 = vector.extract_strided_slice %30 {offsets = [0, 6], sizes = [8, 1], strides = [1, 1]} : vector<8x8xf32> to vector<8x1xf32>
    %38 = vector.extract_strided_slice %30 {offsets = [0, 7], sizes = [8, 1], strides = [1, 1]} : vector<8x8xf32> to vector<8x1xf32>
    %39 = tpu.concatenate %31, %32, %33, %34, %35, %36, %37, %38 in 0 : vector<8x1xf32>, vector<8x1xf32>, vector<8x1xf32>, vector<8x1xf32>, vector<8x1xf32>, vector<8x1xf32>, vector<8x1xf32>, vector<8x1xf32> -> vector<64x1xf32>
    %c0_17 = arith.constant 0 : index
    %c0_18 = arith.constant 0 : index
    %40 = vector.load %arg3[%c0_17, %c0_18] : memref<1x64xf32, #tpu.memory_space<vmem>>, vector<1x64xf32>
    %41 = vector.broadcast %39 : vector<64x1xf32> to vector<64x64xf32>
    %42 = vector.broadcast %40 : vector<1x64xf32> to vector<64x64xf32>
    %43 = arith.mulf %41, %42 : vector<64x64xf32>
    %44 = math.cos %43 : vector<64x64xf32>
    %c0_19 = arith.constant 0 : index
    %c0_20 = arith.constant 0 : index
    %45 = vector.load %arg8[%c0_19, %c0_20] : memref<64x32xf32, #tpu.memory_space<vmem>>, vector<64x32xf32>
    %cst_21 = arith.constant dense<0.000000e+00> : vector<64x32xf32>
    %46 = tpu.matmul %44, %45, %cst_21 {dimension_numbers = #tpu.dot_dimension_numbers<[1], [0], [0], [1], [0, 0, 1, 1], [], []>} : vector<64x64xf32>, vector<64x32xf32>, vector<64x32xf32> -> vector<64x32xf32>
    %c0_22 = arith.constant 0 : index
    %c0_23 = arith.constant 0 : index
    %47 = vector.load %arg9[%c0_22, %c0_23] : memref<1x32xf32, #tpu.memory_space<vmem>>, vector<1x32xf32>
    %48 = vector.broadcast %47 : vector<1x32xf32> to vector<64x32xf32>
    %49 = arith.addf %46, %48 : vector<64x32xf32>
    %cst_24 = arith.constant 0.000000e+00 : f32
    %50 = vector.broadcast %cst_24 : f32 to vector<64x32xf32>
    %51 = arith.maximumf %49, %50 : vector<64x32xf32>
    %52 = tpu.concatenate %29, %29, %29, %29, %29, %29, %29, %29 in 0 : vector<8x32xf32>, vector<8x32xf32>, vector<8x32xf32>, vector<8x32xf32>, vector<8x32xf32>, vector<8x32xf32>, vector<8x32xf32>, vector<8x32xf32> -> vector<64x32xf32>
    %53 = arith.mulf %52, %51 : vector<64x32xf32>
    %c0_25 = arith.constant 0 : index
    %c0_26 = arith.constant 0 : index
    %54 = vector.load %arg10[%c0_25, %c0_26] : memref<32x32xf32, #tpu.memory_space<vmem>>, vector<32x32xf32>
    %cst_27 = arith.constant dense<0.000000e+00> : vector<64x32xf32>
    %55 = tpu.matmul %53, %54, %cst_27 {dimension_numbers = #tpu.dot_dimension_numbers<[1], [0], [0], [1], [0, 0, 1, 1], [], []>} : vector<64x32xf32>, vector<32x32xf32>, vector<64x32xf32> -> vector<64x32xf32>
    %c0_28 = arith.constant 0 : index
    %c0_29 = arith.constant 0 : index
    %56 = vector.load %arg11[%c0_28, %c0_29] : memref<1x32xf32, #tpu.memory_space<vmem>>, vector<1x32xf32>
    %57 = vector.broadcast %56 : vector<1x32xf32> to vector<64x32xf32>
    %58 = arith.addf %55, %57 : vector<64x32xf32>
    %c0_30 = arith.constant 0 : index
    %c0_31 = arith.constant 0 : index
    %59 = vector.load %arg12[%c0_30, %c0_31] : memref<1x32xf32, #tpu.memory_space<vmem>>, vector<1x32xf32>
    %c0_32 = arith.constant 0 : index
    %c0_33 = arith.constant 0 : index
    %60 = vector.load %arg13[%c0_32, %c0_33] : memref<1x32xf32, #tpu.memory_space<vmem>>, vector<1x32xf32>
    %cst_34 = arith.constant dense<0.000000e+00> : vector<64xf32>
    %61 = vector.multi_reduction <add>, %58, %cst_34 [1] : vector<64x32xf32> to vector<64xf32>
    %62 = vector.shape_cast %61 : vector<64xf32> to vector<64x1xf32>
    %cst_35 = arith.constant 3.200000e+01 : f32
    %63 = vector.broadcast %cst_35 : f32 to vector<64x1xf32>
    %64 = arith.divf %62, %63 : vector<64x1xf32>
    %65 = vector.broadcast %64 : vector<64x1xf32> to vector<64x32xf32>
    %66 = arith.subf %58, %65 : vector<64x32xf32>
    %67 = arith.mulf %66, %66 : vector<64x32xf32>
    %cst_36 = arith.constant dense<0.000000e+00> : vector<64xf32>
    %68 = vector.multi_reduction <add>, %67, %cst_36 [1] : vector<64x32xf32> to vector<64xf32>
    %69 = vector.shape_cast %68 : vector<64xf32> to vector<64x1xf32>
    %cst_37 = arith.constant 3.200000e+01 : f32
    %70 = vector.broadcast %cst_37 : f32 to vector<64x1xf32>
    %71 = arith.divf %69, %70 : vector<64x1xf32>
    %cst_38 = arith.constant 9.99999974E-6 : f32
    %72 = vector.broadcast %cst_38 : f32 to vector<64x1xf32>
    %73 = arith.addf %71, %72 : vector<64x1xf32>
    %74 = math.rsqrt %73 : vector<64x1xf32>
    %75 = vector.broadcast %74 : vector<64x1xf32> to vector<64x32xf32>
    %76 = arith.mulf %66, %75 : vector<64x32xf32>
    %77 = vector.broadcast %59 : vector<1x32xf32> to vector<64x32xf32>
    %78 = arith.mulf %76, %77 : vector<64x32xf32>
    %79 = vector.broadcast %60 : vector<1x32xf32> to vector<64x32xf32>
    %80 = arith.addf %78, %79 : vector<64x32xf32>
    %cst_39 = arith.constant 0.000000e+00 : f32
    %81 = vector.broadcast %cst_39 : f32 to vector<64x32xf32>
    %82 = arith.maximumf %80, %81 : vector<64x32xf32>
    %c0_40 = arith.constant 0 : index
    %c0_41 = arith.constant 0 : index
    %83 = vector.load %arg14[%c0_40, %c0_41] : memref<1x32xf32, #tpu.memory_space<vmem>>, vector<1x32xf32>
    %84 = vector.broadcast %83 : vector<1x32xf32> to vector<64x32xf32>
    %85 = arith.mulf %82, %84 : vector<64x32xf32>
    %cst_42 = arith.constant dense<0.000000e+00> : vector<64xf32>
    %86 = vector.multi_reduction <add>, %85, %cst_42 [1] : vector<64x32xf32> to vector<64xf32>
    %87 = vector.shape_cast %86 : vector<64xf32> to vector<64x1xf32>
    %c0_43 = arith.constant 0 : index
    %c0_44 = arith.constant 0 : index
    %88 = memref.load %arg15[%c0_43, %c0_44] : memref<1x1xf32, #tpu.memory_space<smem>>
    %89 = vector.broadcast %88 : f32 to vector<64x1xf32>
    %90 = arith.addf %87, %89 : vector<64x1xf32>
    %91 = vector.extract_strided_slice %90 {offsets = [0, 0], sizes = [8, 1], strides = [1, 1]} : vector<64x1xf32> to vector<8x1xf32>
    %92 = vector.extract_strided_slice %90 {offsets = [8, 0], sizes = [8, 1], strides = [1, 1]} : vector<64x1xf32> to vector<8x1xf32>
    %93 = vector.extract_strided_slice %90 {offsets = [16, 0], sizes = [8, 1], strides = [1, 1]} : vector<64x1xf32> to vector<8x1xf32>
    %94 = vector.extract_strided_slice %90 {offsets = [24, 0], sizes = [8, 1], strides = [1, 1]} : vector<64x1xf32> to vector<8x1xf32>
    %95 = vector.extract_strided_slice %90 {offsets = [32, 0], sizes = [8, 1], strides = [1, 1]} : vector<64x1xf32> to vector<8x1xf32>
    %96 = vector.extract_strided_slice %90 {offsets = [40, 0], sizes = [8, 1], strides = [1, 1]} : vector<64x1xf32> to vector<8x1xf32>
    %97 = vector.extract_strided_slice %90 {offsets = [48, 0], sizes = [8, 1], strides = [1, 1]} : vector<64x1xf32> to vector<8x1xf32>
    %98 = vector.extract_strided_slice %90 {offsets = [56, 0], sizes = [8, 1], strides = [1, 1]} : vector<64x1xf32> to vector<8x1xf32>
    %99 = tpu.concatenate %91, %92, %93, %94, %95, %96, %97, %98 in 1 : vector<8x1xf32>, vector<8x1xf32>, vector<8x1xf32>, vector<8x1xf32>, vector<8x1xf32>, vector<8x1xf32>, vector<8x1xf32>, vector<8x1xf32> -> vector<8x8xf32>
    %c0_45 = arith.constant 0 : index
    %c0_46 = arith.constant 0 : index
    %100 = vector.load %arg16[%c0_45, %c0_46] : memref<8x8xf32, #tpu.memory_space<vmem>>, vector<8x8xf32>
    tpu.vector_store %arg16[%c0_45, %c0_46], %99 {strides = array<i32>} : memref<8x8xf32, #tpu.memory_space<vmem>>, vector<8x8xf32>,
    return
  }
  func.func @transform_0(%arg0: i32) -> (i32, i32) {
    %c0_i32 = arith.constant 0 : i32
    %c0_i32_0 = arith.constant 0 : i32
    return %arg0, %c0_i32 : i32, i32
  }
  func.func @transform_1(%arg0: i32) -> (i32, i32) {
    %c0_i32 = arith.constant 0 : i32
    %c0_i32_0 = arith.constant 0 : i32
    return %arg0, %c0_i32 : i32, i32
  }
  func.func @transform_2(%arg0: i32) -> (i32, i32) {
    %c0_i32 = arith.constant 0 : i32
    %c0_i32_0 = arith.constant 0 : i32
    %c0_i32_1 = arith.constant 0 : i32
    return %c0_i32, %c0_i32_0 : i32, i32
  }
  func.func @transform_3(%arg0: i32) -> (i32, i32) {
    %c0_i32 = arith.constant 0 : i32
    %c0_i32_0 = arith.constant 0 : i32
    %c0_i32_1 = arith.constant 0 : i32
    return %c0_i32, %c0_i32_0 : i32, i32
  }
  func.func @transform_4(%arg0: i32) -> (i32, i32) {
    %c0_i32 = arith.constant 0 : i32
    %c0_i32_0 = arith.constant 0 : i32
    %c0_i32_1 = arith.constant 0 : i32
    return %c0_i32, %c0_i32_0 : i32, i32
  }
  func.func @transform_5(%arg0: i32) -> (i32, i32) {
    %c0_i32 = arith.constant 0 : i32
    %c0_i32_0 = arith.constant 0 : i32
    %c0_i32_1 = arith.constant 0 : i32
    return %c0_i32, %c0_i32_0 : i32, i32
  }
  func.func @transform_6(%arg0: i32) -> (i32, i32) {
    %c0_i32 = arith.constant 0 : i32
    %c0_i32_0 = arith.constant 0 : i32
    %c0_i32_1 = arith.constant 0 : i32
    return %c0_i32, %c0_i32_0 : i32, i32
  }
  func.func @transform_7(%arg0: i32) -> (i32, i32) {
    %c0_i32 = arith.constant 0 : i32
    %c0_i32_0 = arith.constant 0 : i32
    %c0_i32_1 = arith.constant 0 : i32
    return %c0_i32, %c0_i32_0 : i32, i32
  }
  func.func @transform_8(%arg0: i32) -> (i32, i32) {
    %c0_i32 = arith.constant 0 : i32
    %c0_i32_0 = arith.constant 0 : i32
    %c0_i32_1 = arith.constant 0 : i32
    return %c0_i32, %c0_i32_0 : i32, i32
  }
  func.func @transform_9(%arg0: i32) -> (i32, i32) {
    %c0_i32 = arith.constant 0 : i32
    %c0_i32_0 = arith.constant 0 : i32
    %c0_i32_1 = arith.constant 0 : i32
    return %c0_i32, %c0_i32_0 : i32, i32
  }
  func.func @transform_10(%arg0: i32) -> (i32, i32) {
    %c0_i32 = arith.constant 0 : i32
    %c0_i32_0 = arith.constant 0 : i32
    %c0_i32_1 = arith.constant 0 : i32
    return %c0_i32, %c0_i32_0 : i32, i32
  }
  func.func @transform_11(%arg0: i32) -> (i32, i32) {
    %c0_i32 = arith.constant 0 : i32
    %c0_i32_0 = arith.constant 0 : i32
    %c0_i32_1 = arith.constant 0 : i32
    return %c0_i32, %c0_i32_0 : i32, i32
  }
  func.func @transform_12(%arg0: i32) -> (i32, i32) {
    %c0_i32 = arith.constant 0 : i32
    %c0_i32_0 = arith.constant 0 : i32
    %c0_i32_1 = arith.constant 0 : i32
    return %c0_i32, %c0_i32_0 : i32, i32
  }
  func.func @transform_13(%arg0: i32) -> (i32, i32) {
    %c0_i32 = arith.constant 0 : i32
    %c0_i32_0 = arith.constant 0 : i32
    %c0_i32_1 = arith.constant 0 : i32
    return %c0_i32, %c0_i32_0 : i32, i32
  }
  func.func @transform_14(%arg0: i32) -> (i32, i32) {
    %c0_i32 = arith.constant 0 : i32
    %c0_i32_0 = arith.constant 0 : i32
    %c0_i32_1 = arith.constant 0 : i32
    return %c0_i32, %c0_i32_0 : i32, i32
  }
  func.func @transform_15(%arg0: i32) -> (i32, i32) {
    %c0_i32 = arith.constant 0 : i32
    %c0_i32_0 = arith.constant 0 : i32
    return %arg0, %c0_i32 : i32, i32
  }
}

</mosaic_0001>

<bundles_post_ra>
// kernel: iqn_forward.1
= control target key start
LH: loop header
LB: loop body
LE: loop exit
PB: predicated region body
PF: predicated region fallthrough
CT: control target
= control target key end

     0   :  { %vm66_vm0 = vcmask 1043456   ;;  %v1819_v0 = vmov 0.0   ;;  %vm1820_vm1 = vmmov 0   ;;  %s1821_s24 = smov 125   ;;  %s1822_s25 = smov 127   ;;  %vm62_vm2 = vcmask 162816   ;;  %s2746_s3 = inlined_call_operand.vmem [shape: f32[20,32], index: 3, kind: input, shape index: {}]   ;;  %s2747_s1 = inlined_call_operand.vmem [shape: f32[8,8], index: 1, kind: input, shape index: {}]   ;;  %s2748_s0 = inlined_call_operand.vmem [shape: f32[8,20], index: 0, kind: input, shape index: {}]   ;;  %s2749_s2 = inlined_call_operand.vmem [shape: f32[1,64], index: 2, kind: input, shape index: {}]   ;;  %s2750_s4 = inlined_call_operand.vmem [shape: f32[1,32], index: 4, kind: input, shape index: {}]   ;;  %s2751_s7 = inlined_call_operand.vmem [shape: f32[64,32], index: 7, kind: input, shape index: {}]   ;;  %s2752_s9 = inlined_call_operand.vmem [shape: f32[32,32], index: 9, kind: input, shape index: {}]   ;;  %s2753_s5 = inlined_call_operand.vmem [shape: f32[1,32], index: 5, kind: input, shape index: {}]   ;;  %s2754_s6 = inlined_call_operand.vmem [shape: f32[1,32], index: 6, kind: input, shape index: {}]   ;;  %s2755_s8 = inlined_call_operand.vmem [shape: f32[1,32], index: 8, kind: input, shape index: {}]   ;;  %s2756_s10 = inlined_call_operand.vmem [shape: f32[1,32], index: 10, kind: input, shape index: {}]   ;;  %s2757_s11 = inlined_call_operand.vmem [shape: f32[1,32], index: 11, kind: input, shape index: {}]   ;;  %s2758_s12 = inlined_call_operand.vmem [shape: f32[1,32], index: 12, kind: input, shape index: {}]   ;;  %s2759_s13 = inlined_call_operand.vmem [shape: f32[1,32], index: 13, kind: input, shape index: {}]   ;;  %s2760_s14 = inlined_call_operand.<no memory space> [shape: f32[1,1], index: 14, kind: input, shape index: {}]   ;;  %s2761_s15 = inlined_call_operand.vmem [shape: f32[8,8], index: 15, kind: output, shape index: {}]  }
   0x1   :  { %1662 = vmatprep.subr.mxu0 %v1819_v0  ;;  %v54_v1 = vld [vmem:[%s2746_s3 + $0x10] sm:$0xf]  ;;  %v172_v2 = vld [vmem:[%s2747_s1] sm:$0xff]  ;;  %v53_v3 = vld [vmem:[%s2746_s3 + $0x8] sm:$0xff]  ;;  %1668 = vmatprep.mubr.msk.f32.mxu0 %vm1820_vm1, %v1819_v0  ;;  %v1823_v6 = vmov 0   ;;  %s1824_s1 = smov 124  }
   0x2   :  { %1663 = vmatpush3.msk.msra.mxu0 %vm66_vm0, %v54_v1  ;;  %178 = vrot.lane.b32.xlu1 %v172_v2, %s1821_s24  ;;  %v52_v4 = vld [vmem:[%s2746_s3] sm:$0xff]  ;;  %s1825_s30 = smov 126   ;;  %s1826_s16 = smov 122   ;;  %v1829_v27 = vmov 2102212464   ;;  %vm142_vm10 = vcmask 261120  }
   0x3   :  { %174 = vrot.lane.b32.xlu0 %v172_v2, %s1822_s25  ;;  %1664 = vmatprep.subr.mxu0 %v1819_v0  ;;  %v51_v5 = vld [vmem:[%s2748_s0] sm:$0xff]  ;;  %s1827_s17 = smov 123   ;;  %s1828_s3 = smov 121   ;;  %v1830_v29 = vmov 920167782   ;;  %vm1074_vm1 = vcmask 523264  }
   0x4   :  { %1665 = vmatpush3.msra.mxu0 %v53_v3  ;;  %1767 = vset.pattern.permute.xlu1 %v1823_v6  ;;  %v1933_v14 = vld [vmem:[%s2749_s2] ss:$0 sm:$0xff]  ;;  %v1831_v32 = vmov 683565275   ;;  %v1832_v34 = vmov 2475754826  }
   0x5   :  { %1666 = vmatprep.subr.mxu0 %v1819_v0  ;;  %1768 = vset.pattern.permute.xlu0 %v1823_v6  ;;  %v1833_v36 = vmov 2131351028   ;;  %v1834_v39 = vmov 1326507024  }
   0x6   :  { %1667 = vmatpush3.msra.mxu0 %v52_v4  ;;  %180 = vrot.lane.b32.xlu1 %v172_v2, %s1824_s1 }
   0x7   :  { %176 = vrot.lane.b32.xlu0 %v172_v2, %s1825_s30  ;;  %1669 = vmatmul.mubr.msk.f32.vlgmr.msra.gmra.mxu0 %vm62_vm2, %v51_v5 }
   0xa   :  { %184 = vrot.lane.b32.xlu1 %v172_v2, %s1826_s16 }
   0xb   :  { %182 = vrot.lane.b32.xlu0 %v172_v2, %s1827_s17 }
   0xe   :  { %190 = vperm.xlu1 %1767, %v172_v2  }
   0xf   :  { %186 = vrot.lane.b32.xlu0 %v172_v2, %s1828_s3 }
  0x74   :  { %v179_v7 = vpop.permute.xlu1 %178 }
  0x75   :  { %v175_v8 = vpop.permute.xlu0 %174 }
  0x76   :  { %194 = vperm.xlu0 %1768, %v175_v8  }
  0x78   :  { %v181_v9 = vpop.permute.xlu1 %180 }
  0x79   :  { %v177_v10 = vpop.permute.xlu0 %176 }
  0x7a   :  { %206 = vperm.xlu0 %1768, %v181_v9   ;;  %198 = vperm.xlu1 %1767, %v177_v10  }
  0x7c   :  { %v185_v11 = vpop.permute.xlu1 %184 }
  0x7d   :  { %v183_v12 = vpop.permute.xlu0 %182 }
  0x7e   :  { %214 = vperm.xlu0 %1768, %v185_v11   ;;  %202 = vperm.xlu1 %1767, %v179_v7  }
  0x81   :  { %v187_v13 = vpop.permute.xlu0 %186 }
  0x82   :  { %210 = vperm.xlu1 %1767, %v183_v12  }
  0x86   :  { %218 = vperm.xlu1 %1767, %v187_v13  }
  0x89   :  { %v191_v15 = vpop.permute.xlu1 %190 }
  0x8a   :  { %v1936_v16 = vmul.f32 %v1933_v14, %v191_v15 }
  0x8c   :  { %v238_v17 = vand.u32 2139095040, %v1936_v16  ;;  %v235_v20 = vand.u32 2147483647, %v1936_v16  ;;  %vm237_vm11 = vcmp.lt.s32.totalorder %v1936_v16, 0  ;;  %vm327_vm0 = vweird.f32 %v1936_v16 }
  0x8e   :  { %v239_v18 = vshrl.u32 %v238_v17, 23  ;;  %v242_v23 = vand.u32 8388607, %v235_v20  ;;  %vm236_vm12 = vcmp.le.f32.partialorder %v235_v20, 0.7853982 }
  0x90   :  { %v1577_v19 = vadd.s32 4294967169, %v239_v18  ;;  %v243_v31 = vor.u32 8388608, %v242_v23 }
  0x92   :  { %v245_v21 = vadd.s32 1, %v1577_v19  ;;  %v283_v50 = vshll.u32 %v243_v31, 8 }
  0x94   :  { %vm246_vm3 = vcmp.gt.s32.totalorder %v245_v21, 0 }
  0x95   :  { %v247_v22 = vsel %vm246_vm3, %v245_v21, 0 }
  0x96   :  { %v249_v24 = vand.u32 31, %v247_v22  ;;  %v248_v25 = vshrl.u32 %v247_v22, 5 }
  0x98   :  { %v250_v26 = vsub.s32 32, %v249_v24  ;;  %v261_v28 = vshll.u32 %v1829_v27, %v249_v24  ;;  %v264_v30 = vshll.u32 %v1830_v29, %v249_v24  ;;  %v252_v33 = vshll.u32 %v1831_v32, %v249_v24 }
  0x99   :  { %v255_v35 = vshll.u32 %v1832_v34, %v249_v24  ;;  %v258_v37 = vshll.u32 %v1833_v36, %v249_v24  ;;  %vm270_vm4 = vcmp.lt.s32.totalorder %v248_v25, 4  ;;  %vm267_vm5 = vcmp.lt.s32.totalorder %v248_v25, 1 }
  0x9a   :  { %v262_v38 = vshrl.u32 %v1830_v29, %v250_v26  ;;  %v265_v40 = vshrl.u32 %v1834_v39, %v250_v26  ;;  %v251_v41 = vshrl.u32 %v1831_v32, %v250_v26  ;;  %v253_v42 = vshrl.u32 %v1832_v34, %v250_v26 }
  0x9b   :  { %v256_v43 = vshrl.u32 %v1833_v36, %v250_v26  ;;  %v259_v44 = vshrl.u32 %v1829_v27, %v250_v26  ;;  %vm269_vm6 = vcmp.lt.s32.totalorder %v248_v25, 3  ;;  %vm268_vm7 = vcmp.lt.s32.totalorder %v248_v25, 2 }
  0x9c   :  { %v263_v45 = vor.u32 %v262_v38, %v261_v28  ;;  %v266_v46 = vor.u32 %v265_v40, %v264_v30  ;;  %v254_v47 = vor.u32 %v253_v42, %v252_v33  ;;  %v1571_v33 = vld [vmem:[%s2750_s4] ss:$0 sm:$0xff] }
  0x9d   :  { %v257_v48 = vor.u32 %v256_v43, %v255_v35  ;;  %v260_v49 = vor.u32 %v259_v44, %v258_v37 }
  0x9e   :  { %v276_v51 = vsel %vm270_vm4, %v263_v45, 920167782  ;;  %v280_v52 = vsel %vm270_vm4, %v266_v46, 1326507024  ;;  %v271_v53 = vsel %vm267_vm5, %v251_v41, %v254_v47 }
  0x9f   :  { %v272_v54 = vsel %vm270_vm4, %v260_v49, 2102212464  ;;  %v275_v55 = vsel %vm267_vm5, %v254_v47, %v257_v48  ;;  %v277_v56 = vsel %vm269_vm6, %v260_v49, %v276_v51  ;;  %v279_v57 = vsel %vm267_vm5, %v257_v48, %v260_v49 }
  0xa0   :  { %v273_v58 = vsel %vm269_vm6, %v257_v48, %v272_v54  ;;  %v278_v59 = vsel %vm268_vm7, %v275_v55, %v277_v56  ;;  %v281_v60 = vsel %vm269_vm6, %v263_v45, %v280_v52 }
  0xa1   :  { %v274_v61 = vsel %vm268_vm7, %v271_v53, %v273_v58  ;;  %v282_v62 = vsel %vm268_vm7, %v279_v57, %v281_v60  ;;  %v1953_v63 = vmul.u32.u64.low %v283_v50, %v278_v59  ;;  %v1954_v0 = vmul.u32.u64.high %v283_v50, %v278_v59, %v1953_v63 }
  0xa2   :  { %v1956_v1 = vmul.u32.u64.low %v283_v50, %v282_v62  ;;  %v1957_v2 = vmul.u32.u64.high %v283_v50, %v282_v62, %v1956_v1  ;;  %v290_v3 = vmul.u32 %v283_v50, %v274_v61 }
  0xa3   :  { %v293_v4 = vadd.s32 1, %v1954_v0 }
  0xa4   :  { %vm292_vm8 = vc.u32 %v1957_v2, %v1953_v63  ;;  %v291_v17 = vadd.s32 %v1953_v63, %v1957_v2 }
  0xa5   :  { %v294_v5 = vsel %vm292_vm8, %v293_v4, %v1954_v0 }
  0xa6   :  { %v295_v6 = vadd.s32 %v294_v5, %v290_v3 }
  0xa8   :  { %v296_v7 = vadd.s32 536870912, %v295_v6 }
  0xaa   :  { %v297_v8 = vshrl.u32 %v296_v7, 30 }
  0xac   :  { %v298_v9 = vshll.u32 %v297_v8, 30  ;;  %v321_v44 = vsub.s32 4, %v297_v8 }
  0xae   :  { %v299_v10 = vsub.s32 %v295_v6, %v298_v9  ;;  %v322_v46 = vsel %vm237_vm11, %v321_v44, %v297_v8 }
  0xaf   :  { %v324_v47 = vsel %vm236_vm12, 0, %v322_v46 }
  0xb0   :  { %v301_v11 = vsub.s32 0, %v299_v10  ;;  %v328_v48 = vand.u32 3, %v324_v47 }
  0xb2   :  { %v1578_v12 = vmin.u32 %v301_v11, %v299_v10  ;;  %vm333_vm13 = vcmp.eq.s32.totalorder %v328_v48, 2  ;;  %vm330_vm14 = vcmp.eq.s32.totalorder %v328_v48, 0  ;;  %vm329_vm15 = vcmp.lt.s32.totalorder %v328_v48, 2 }
  0xb4   :  { %v303_v13 = vclz %v1578_v12 }
  0xb6   :  { %v1579_v15 = vadd.s32 4294967294, %v303_v13 }
  0xb8   :  { %vm1580_vm9 = vcmp.lt.s32.totalorder %v1579_v15, 0 }
  0xb9   :  { %v306_v18 = vsel %vm1580_vm9, 0, %v1579_v15 }
  0xba   :  { %v307_v19 = vsub.s32 32, %v306_v18  ;;  %v308_v21 = vshll.u32 %v299_v10, %v306_v18  ;;  %v311_v22 = vsub.s32 4294967266, %v306_v18 }
  0xbc   :  { %v309_v23 = vshrl.u32 %v291_v17, %v307_v19  ;;  %v312_v24 = vadd.s32 127, %v311_v22 }
  0xbe   :  { %v310_v25 = vor.u32 %v309_v23, %v308_v21  ;;  %v313_v26 = vshll.u32 %v312_v24, 23 }
  0xc0   :  { %v314_v28 = vor.u32 4788187, %v313_v26  ;;  %v317_v30 = vcvt.s32.f32 %v310_v25 }
  0xc2   :  { %v315_v31 = vand.u32 2147483647, %v314_v28 }
  0xc4   :  { %v318_v35 = vmul.f32 %v317_v30, %v315_v31 }
  0xc6   :  { %v319_v40 = vxor.u32 2147483648, %v318_v35 }
  0xc7   :  { %v136_v37 = vpop.f32.mrf.mxu0 }
  0xc8   :  { %v1967_v38 = vadd.f32 %v1571_v33, %v136_v37  ;;  %v320_v43 = vsel %vm237_vm11, %v319_v40, %v318_v35 }
  0xc9   :  { %v1670_v41 = vpop.f32.mrf.mxu0  ;;  %v323_v45 = vsel %vm236_vm12, %v1936_v16, %v320_v43 }
  0xca   :  { %v143_v42 = vsel %vm142_vm10, %v1967_v38, 0.0  ;;  %1769 = vcosq.f32 %v323_v45 }
  0xcb   :  { %144 = vadd.xlane.f32.xlu0 %v143_v42  ;;  %1771 = vsinq.f32 %v323_v45 }
  0xd7   :  { %v1770_v49 = vpop.eup %1769 }
  0xd8   :  { %v1772_v50 = vpop.eup %1771  ;;  %v334_v20 = vxor.u32 2147483648, %v1770_v49 }
  0xd9   :  { %v331_v51 = vxor.u32 2147483648, %v1772_v50 }
  0xda   :  { %v335_v52 = vsel %vm333_vm13, %v334_v20, %v1772_v50 }
  0xdb   :  { %v332_v53 = vsel %vm330_vm14, %v1770_v49, %v331_v51 }
  0xdc   :  { %v336_v54 = vsel %vm329_vm15, %v332_v53, %v335_v52 }
  0xdd   :  { %v337_v55 = vsel %vm327_vm0, nan, %v336_v54 }
  0xde   :  { %1687 = vmatprep.mubr.msk.f32.mxu1 %vm1074_vm1, %v337_v55 }
  0xf1   :  { %v195_v56 = vpop.permute.xlu0 %194 }
  0xf2   :  { %v1977_v57 = vmul.f32 %v1933_v14, %v195_v56 }
  0xf4   :  { %v338_v58 = vand.u32 2147483647, %v1977_v57  ;;  %v341_v59 = vand.u32 2139095040, %v1977_v57 }
  0xf5   :  { %v199_v60 = vpop.permute.xlu1 %198  ;;  %v207_v61 = vpop.permute.xlu0 %206 }
  0xf6   :  { %v342_v62 = vshrl.u32 %v341_v59, 23  ;;  %v345_v16 = vand.u32 8388607, %v338_v58  ;;  %v1984_v63 = vmul.f32 %v1933_v14, %v199_v60  ;;  %v1987_v0 = vmul.f32 %v1933_v14, %v207_v61 }
  0xf8   :  { %v1581_v1 = vadd.s32 4294967169, %v342_v62  ;;  %v441_v2 = vand.u32 2147483647, %v1984_v63  ;;  %v444_v3 = vand.u32 2139095040, %v1984_v63  ;;  %v647_v4 = vand.u32 2147483647, %v1987_v0 }
  0xf9   :  { %v650_v5 = vand.u32 2139095040, %v1987_v0  ;;  %v203_v6 = vpop.permute.xlu1 %202  ;;  %v346_v7 = vor.u32 8388608, %v345_v16 }
  0xfa   :  { %v348_v8 = vadd.s32 1, %v1581_v1  ;;  %v448_v9 = vand.u32 8388607, %v441_v2  ;;  %v445_v10 = vshrl.u32 %v444_v3, 23  ;;  %v1997_v12 = vand.u32 8388607, %v647_v4 }
  0xfb   :  { %v651_v11 = vshrl.u32 %v650_v5, 23  ;;  %v2000_v13 = vmul.f32 %v1933_v14, %v203_v6  ;;  %v2002_v22 = vshll.u32 %v346_v7, 8 }
  0xfc   :  { %vm349_vm2 = vcmp.gt.s32.totalorder %v348_v8, 0  ;;  %v1585_v17 = vadd.s32 4294967169, %v445_v10  ;;  %v449_v23 = vor.u32 8388608, %v448_v9  ;;  %v655_v25 = vor.u32 8388608, %v1997_v12 }
  0xfd   :  { %v350_v15 = vsel %vm349_vm2, %v348_v8, 0  ;;  %v1593_v18 = vadd.s32 4294967169, %v651_v11  ;;  %v544_v26 = vand.u32 2147483647, %v2000_v13 }
  0xfe   :  { %v351_v19 = vshrl.u32 %v350_v15, 5  ;;  %v352_v21 = vand.u32 31, %v350_v15  ;;  %v451_v24 = vadd.s32 1, %v1585_v17  ;;  %v2028_v7 = vshll.u32 %v449_v23, 8 }
  0xff   :  { %v2008_v33 = vadd.s32 1, %v1593_v18 }
 0x100   :  { %v353_v28 = vsub.s32 32, %v352_v21  ;;  %v355_v30 = vshll.u32 %v1831_v32, %v352_v21  ;;  %v358_v31 = vshll.u32 %v1832_v34, %v352_v21  ;;  %v361_v35 = vshll.u32 %v1833_v36, %v352_v21 }
 0x101   :  { %v364_v37 = vshll.u32 %v1829_v27, %v352_v21  ;;  %v367_v40 = vshll.u32 %v1830_v29, %v352_v21  ;;  %vm370_vm3 = vcmp.lt.s32.totalorder %v351_v19, 1  ;;  %vm371_vm4 = vcmp.lt.s32.totalorder %v351_v19, 2 }
 0x102   :  { %v356_v41 = vshrl.u32 %v1832_v34, %v353_v28  ;;  %v359_v42 = vshrl.u32 %v1833_v36, %v353_v28  ;;  %v362_v43 = vshrl.u32 %v1829_v27, %v353_v28  ;;  %v354_v44 = vshrl.u32 %v1831_v32, %v353_v28 }
 0x103   :  { %v365_v45 = vshrl.u32 %v1830_v29, %v353_v28  ;;  %v368_v46 = vshrl.u32 %v1834_v39, %v353_v28  ;;  %vm372_vm5 = vcmp.lt.s32.totalorder %v351_v19, 3  ;;  %vm452_vm6 = vcmp.gt.s32.totalorder %v451_v24, 0 }
 0x104   :  { %v357_v47 = vor.u32 %v356_v41, %v355_v30  ;;  %v360_v48 = vor.u32 %v359_v42, %v358_v31  ;;  %v363_v49 = vor.u32 %v362_v43, %v361_v35  ;;  %vm373_vm7 = vcmp.lt.s32.totalorder %v351_v19, 4 }
 0x105   :  { %v366_v50 = vor.u32 %v365_v45, %v364_v37  ;;  %v369_v20 = vor.u32 %v368_v46, %v367_v40  ;;  %v453_v51 = vsel %vm452_vm6, %v451_v24, 0  ;;  %vm658_vm8 = vcmp.gt.s32.totalorder %v2008_v33, 0 }
 0x106   :  { %v374_v52 = vsel %vm370_vm3, %v354_v44, %v357_v47  ;;  %v375_v53 = vsel %vm373_vm7, %v363_v49, 2102212464  ;;  %v378_v54 = vsel %vm370_vm3, %v357_v47, %v360_v48  ;;  %v382_v55 = vsel %vm370_vm3, %v360_v48, %v363_v49 }
 0x107   :  { %v376_v56 = vsel %vm372_vm5, %v360_v48, %v375_v53  ;;  %v379_v59 = vsel %vm373_vm7, %v366_v50, 920167782  ;;  %v383_v60 = vsel %vm373_vm7, %v369_v20, 1326507024  ;;  %v454_v61 = vshrl.u32 %v453_v51, 5 }
 0x108   :  { %v377_v62 = vsel %vm371_vm4, %v374_v52, %v376_v56  ;;  %v380_v16 = vsel %vm372_vm5, %v363_v49, %v379_v59  ;;  %v384_v1 = vsel %vm372_vm5, %v366_v50, %v383_v60  ;;  %v455_v3 = vand.u32 31, %v453_v51 }
 0x109   :  { %v381_v5 = vsel %vm371_vm4, %v378_v54, %v380_v16  ;;  %v385_v6 = vsel %vm371_vm4, %v382_v55, %v384_v1  ;;  %v393_v15 = vmul.u32 %v2002_v22, %v377_v62  ;;  %vm473_vm9 = vcmp.lt.s32.totalorder %v454_v61, 1 }
 0x10a   :  { %v2032_v8 = vmul.u32.u64.low %v2002_v22, %v385_v6  ;;  %v2033_v9 = vmul.u32.u64.high %v2002_v22, %v385_v6, %v2032_v8  ;;  %v2036_v10 = vmul.u32.u64.low %v2002_v22, %v381_v5  ;;  %v2037_v11 = vmul.u32.u64.high %v2002_v22, %v381_v5, %v2036_v10 }
 0x10b   :  { %v456_v17 = vsub.s32 32, %v455_v3  ;;  %v458_v18 = vshll.u32 %v1831_v32, %v455_v3  ;;  %v461_v19 = vshll.u32 %v1832_v34, %v455_v3  ;;  %v464_v21 = vshll.u32 %v1833_v36, %v455_v3 }
 0x10c   :  { %v467_v23 = vshll.u32 %v1829_v27, %v455_v3  ;;  %v470_v24 = vshll.u32 %v1830_v29, %v455_v3  ;;  %vm475_vm11 = vcmp.lt.s32.totalorder %v454_v61, 3  ;;  %vm395_vm12 = vc.u32 %v2033_v9, %v2036_v10 }
 0x10d   :  { %v459_v28 = vshrl.u32 %v1832_v34, %v456_v17  ;;  %v462_v30 = vshrl.u32 %v1833_v36, %v456_v17  ;;  %v465_v31 = vshrl.u32 %v1829_v27, %v456_v17  ;;  %v396_v22 = vadd.s32 1, %v2037_v11 }
 0x10e   :  { %v457_v35 = vshrl.u32 %v1831_v32, %v456_v17  ;;  %v468_v37 = vshrl.u32 %v1830_v29, %v456_v17  ;;  %v471_v43 = vshrl.u32 %v1834_v39, %v456_v17  ;;  %vm476_vm13 = vcmp.lt.s32.totalorder %v454_v61, 4 }
 0x10f   :  { %v460_v40 = vor.u32 %v459_v28, %v458_v18  ;;  %v463_v41 = vor.u32 %v462_v30, %v461_v19  ;;  %v466_v42 = vor.u32 %v465_v31, %v464_v21  ;;  %v397_v44 = vsel %vm395_vm12, %v396_v22, %v2037_v11  ;;  %v1065_v22 = vld [vmem:[%s2751_s7 + $0x30] sm:$0xff] }
 0x110   :  { %v469_v45 = vor.u32 %v468_v37, %v467_v23  ;;  %v659_v46 = vsel %vm658_vm8, %v2008_v33, 0  ;;  %v398_v47 = vadd.s32 %v397_v44, %v393_v15  ;;  %v472_v48 = vor.u32 %v471_v43, %v470_v24  ;;  %v1066_v23 = vld [vmem:[%s2751_s7 + $0x38] sm:$0xff] }
 0x111   :  { %v477_v49 = vsel %vm473_vm9, %v457_v35, %v460_v40  ;;  %v478_v50 = vsel %vm476_vm13, %v466_v42, 2102212464  ;;  %v481_v51 = vsel %vm473_vm9, %v460_v40, %v463_v41  ;;  %v485_v53 = vsel %vm473_vm9, %v463_v41, %v466_v42  ;;  %1671 = vmatprep.subr.mxu1 %v1066_v23 }
 0x112   :  { %v479_v20 = vsel %vm475_vm11, %v463_v41, %v478_v50  ;;  %v482_v52 = vsel %vm476_vm13, %v469_v45, 920167782  ;;  %v399_v54 = vadd.s32 536870912, %v398_v47  ;;  %vm474_vm14 = vcmp.lt.s32.totalorder %v454_v61, 2  ;;  %1672 = vmatpush3.msra.mxu1 %v1066_v23 }
 0x113   :  { %v483_v55 = vsel %vm475_vm11, %v466_v42, %v482_v52  ;;  %v486_v56 = vsel %vm476_vm13, %v472_v48, 1326507024  ;;  %v480_v59 = vsel %vm474_vm14, %v477_v49, %v479_v20  ;;  %v2065_v62 = vshrl.u32 %v659_v46, 5  ;;  %1673 = vmatprep.subr.mxu1 %v1065_v22 }
 0x114   :  { %v484_v60 = vsel %vm474_vm14, %v481_v51, %v483_v55  ;;  %v487_v33 = vsel %vm475_vm11, %v469_v45, %v486_v56  ;;  %v2067_v16 = vshrl.u32 %v399_v54, 30  ;;  %v661_v11 = vand.u32 31, %v659_v46  ;;  %1674 = vmatpush3.msra.mxu1 %v1065_v22  ;;  %v1064_v46 = vld [vmem:[%s2751_s7 + $0x28] sm:$0xff]  ;;  %v1063_v54 = vld [vmem:[%s2751_s7 + $0x20] sm:$0xff] }
 0x115   :  { %v488_v1 = vsel %vm474_vm14, %v485_v53, %v487_v33  ;;  %v2070_v3 = vmul.u32.u64.low %v2028_v7, %v484_v60  ;;  %v2071_v5 = vmul.u32.u64.high %v2028_v7, %v484_v60, %v2070_v3  ;;  %v547_v15 = vand.u32 2139095040, %v2000_v13  ;;  %1675 = vmatprep.subr.mxu1 %v1064_v46 }
 0x116   :  { %v2075_v6 = vmul.u32.u64.low %v2028_v7, %v488_v1  ;;  %v2076_v8 = vmul.u32.u64.high %v2028_v7, %v488_v1, %v2075_v6  ;;  %v401_v61 = vshll.u32 %v2067_v16, 30  ;;  %v496_v17 = vmul.u32 %v2028_v7, %v480_v59  ;;  %1676 = vmatpush3.msra.mxu1 %v1064_v46 }
 0x117   :  { %vm679_vm15 = vcmp.lt.s32.totalorder %v2065_v62, 1  ;;  %v2084_v18 = vshll.u32 %v655_v25, 8  ;;  %v662_v19 = vsub.s32 32, %v661_v11  ;;  %v664_v21 = vshll.u32 %v1831_v32, %v661_v11  ;;  %1677 = vmatprep.subr.mxu1 %v1063_v54  ;;  %v1062_v6 = vld [vmem:[%s2751_s7 + $0x18] sm:$0xff] }
 0x118   :  { %vm681_vm0 = vcmp.lt.s32.totalorder %v2065_v62, 3  ;;  %vm682_vm2 = vcmp.lt.s32.totalorder %v2065_v62, 4  ;;  %v2092_v24 = vsub.s32 %v398_v47, %v401_v61  ;;  %v499_v7 = vadd.s32 1, %v2071_v5  ;;  %1678 = vmatpush3.msra.mxu1 %v1063_v54 }
 0x119   :  { %v667_v28 = vshll.u32 %v1832_v34, %v661_v11  ;;  %v670_v12 = vshll.u32 %v1833_v36, %v661_v11  ;;  %vm680_vm3 = vcmp.lt.s32.totalorder %v2065_v62, 2  ;;  %vm498_vm4 = vc.u32 %v2076_v8, %v2070_v3  ;;  %1679 = vmatprep.subr.mxu1 %v1062_v6 }
 0x11a   :  { %v665_v25 = vshrl.u32 %v1832_v34, %v662_v19  ;;  %v673_v30 = vshll.u32 %v1829_v27, %v661_v11  ;;  %v676_v31 = vshll.u32 %v1830_v29, %v661_v11  ;;  %v404_v35 = vsub.s32 0, %v2092_v24  ;;  %1680 = vmatpush3.msra.mxu1 %v1062_v6 }
 0x11b   :  { %v500_v37 = vsel %vm498_vm4, %v499_v7, %v2071_v5  ;;  %v668_v40 = vshrl.u32 %v1833_v36, %v662_v19  ;;  %v671_v41 = vshrl.u32 %v1829_v27, %v662_v19  ;;  %v674_v44 = vshrl.u32 %v1830_v29, %v662_v19 }
 0x11c   :  { %v501_v42 = vadd.s32 %v500_v37, %v496_v17  ;;  %v666_v43 = vor.u32 %v665_v25, %v664_v21  ;;  %v677_v45 = vshrl.u32 %v1834_v39, %v662_v19  ;;  %v1582_v47 = vmin.u32 %v404_v35, %v2092_v24 }
 0x11d   :  { %v663_v48 = vshrl.u32 %v1831_v32, %v662_v19  ;;  %v669_v49 = vor.u32 %v668_v40, %v667_v28  ;;  %v672_v50 = vor.u32 %v671_v41, %v670_v12  ;;  %v675_v51 = vor.u32 %v674_v44, %v673_v30  ;;  %v1061_v19 = vld [vmem:[%s2751_s7 + $0x10] sm:$0xff]  ;;  %v1060_v12 = vld [vmem:[%s2751_s7 + $0x8] sm:$0xff]  ;;  %v1059_v41 = vld [vmem:[%s2751_s7] sm:$0xff] }
 0x11e   :  { %v502_v20 = vadd.s32 536870912, %v501_v42  ;;  %v678_v52 = vor.u32 %v677_v45, %v676_v31  ;;  %v548_v53 = vshrl.u32 %v547_v15, 23  ;;  %v406_v55 = vclz %v1582_v47  ;;  %1681 = vmatprep.subr.mxu1 %v1061_v19 }
 0x11f   :  { %v684_v56 = vsel %vm682_vm2, %v672_v50, 2102212464  ;;  %v687_v59 = vsel %vm679_vm15, %v666_v43, %v669_v49  ;;  %v691_v60 = vsel %vm679_vm15, %v669_v49, %v672_v50  ;;  %v688_v1 = vsel %vm682_vm2, %v675_v51, 920167782  ;;  %1682 = vmatpush3.msra.mxu1 %v1061_v19 }
 0x120   :  { %v2126_v33 = vshrl.u32 %v502_v20, 30  ;;  %v692_v5 = vsel %vm682_vm2, %v678_v52, 1326507024  ;;  %v1583_v11 = vadd.s32 4294967294, %v406_v55  ;;  %v683_v15 = vsel %vm679_vm15, %v663_v48, %v666_v43  ;;  %1683 = vmatprep.subr.mxu1 %v1060_v12 }
 0x121   :  { %v689_v61 = vsel %vm681_vm0, %v672_v50, %v688_v1  ;;  %v693_v17 = vsel %vm681_vm0, %v675_v51, %v692_v5  ;;  %v685_v23 = vsel %vm681_vm0, %v669_v49, %v684_v56  ;;  %v1589_v31 = vadd.s32 4294967169, %v548_v53  ;;  %v215_v49 = vpop.permute.xlu0 %214  ;;  %1684 = vmatpush3.msra.mxu1 %v1060_v12 }
 0x122   :  { %v504_v21 = vshll.u32 %v2126_v33, 30  ;;  %v690_v7 = vsel %vm680_vm3, %v687_v59, %v689_v61  ;;  %v694_v28 = vsel %vm680_vm3, %v691_v60, %v693_v17  ;;  %vm1584_vm5 = vcmp.lt.s32.totalorder %v1583_v11, 0  ;;  %1685 = vmatprep.subr.mxu1 %v1059_v41 }
 0x123   :  { %v2155_v25 = vmul.u32.u64.low %v2084_v18, %v694_v28  ;;  %v2156_v30 = vmul.u32.u64.high %v2084_v18, %v694_v28, %v2155_v25  ;;  %v409_v22 = vsel %vm1584_vm5, 0, %v1583_v11  ;;  %v551_v45 = vand.u32 8388607, %v544_v26  ;;  %1686 = vmatpush3.msra.mxu1 %v1059_v41 }
 0x124   :  { %v2158_v35 = vsub.s32 %v501_v42, %v504_v21  ;;  %v2161_v37 = vmul.u32.u64.low %v2084_v18, %v690_v7  ;;  %v2162_v40 = vmul.u32.u64.high %v2084_v18, %v690_v7, %v2161_v37  ;;  %v410_v43 = vsub.s32 32, %v409_v22 }
 0x125   :  { %v414_v44 = vsub.s32 4294967266, %v409_v22  ;;  %v394_v42 = vadd.s32 %v2036_v10, %v2033_v9  ;;  %v686_v47 = vsel %vm680_vm3, %v683_v15, %v685_v23  ;;  %v554_v48 = vadd.s32 1, %v1589_v31 }
 0x126   :  { %v507_v46 = vsub.s32 0, %v2158_v35  ;;  %vm704_vm6 = vc.u32 %v2156_v30, %v2161_v37  ;;  %v705_v52 = vadd.s32 1, %v2162_v40  ;;  %v702_v9 = vmul.u32 %v2084_v18, %v686_v47 }
 0x127   :  { %v415_v50 = vadd.s32 127, %v414_v44  ;;  %v412_v20 = vshrl.u32 %v394_v42, %v410_v43  ;;  %vm555_vm7 = vcmp.gt.s32.totalorder %v554_v48, 0  ;;  %v552_v10 = vor.u32 8388608, %v551_v45 }
 0x128   :  { %v1586_v51 = vmin.u32 %v507_v46, %v2158_v35  ;;  %v556_v62 = vsel %vm555_vm7, %v554_v48, 0  ;;  %v2181_v53 = vmul.f32 %v1933_v14, %v215_v49  ;;  %v411_v54 = vshll.u32 %v2092_v24, %v409_v22 }
 0x129   :  { %v706_v56 = vsel %vm704_vm6, %v705_v52, %v2162_v40  ;;  %v558_v59 = vand.u32 31, %v556_v62  ;;  %v416_v60 = vshll.u32 %v415_v50, 23  ;;  %v497_v6 = vadd.s32 %v2070_v3, %v2076_v8 }
 0x12a   :  { %v509_v55 = vclz %v1586_v51  ;;  %v707_v1 = vadd.s32 %v706_v56, %v702_v9  ;;  %v2185_v5 = vor.u32 %v412_v20, %v411_v54  ;;  %v2189_v61 = vshll.u32 %v552_v10, 8 }
 0x12b   :  { %v559_v18 = vsub.s32 32, %v558_v59  ;;  %v853_v17 = vand.u32 2147483647, %v2181_v53  ;;  %v856_v24 = vand.u32 2139095040, %v2181_v53  ;;  %v2193_v19 = vshrl.u32 %v556_v62, 5 }
 0x12c   :  { %v1587_v11 = vadd.s32 4294967294, %v509_v55  ;;  %v708_v15 = vadd.s32 536870912, %v707_v1  ;;  %v417_v7 = vor.u32 4788187, %v416_v60  ;;  %v420_v8 = vcvt.s32.f32 %v2185_v5 }
 0x12d   :  { %v562_v21 = vshrl.u32 %v1832_v34, %v559_v18  ;;  %v565_v23 = vshrl.u32 %v1833_v36, %v559_v18  ;;  %v568_v3 = vshrl.u32 %v1829_v27, %v559_v18  ;;  %v561_v31 = vshll.u32 %v1831_v32, %v558_v59 }
 0x12e   :  { %vm1588_vm8 = vcmp.lt.s32.totalorder %v1587_v11, 0  ;;  %v2197_v12 = vshrl.u32 %v708_v15, 30  ;;  %v564_v22 = vshll.u32 %v1832_v34, %v558_v59  ;;  %v567_v43 = vshll.u32 %v1833_v36, %v558_v59 }
 0x12f   :  { %v512_v28 = vsel %vm1588_vm8, 0, %v1587_v11  ;;  %v570_v44 = vshll.u32 %v1829_v27, %v558_v59  ;;  %v563_v42 = vor.u32 %v562_v21, %v561_v31  ;;  %v571_v47 = vshrl.u32 %v1830_v29, %v559_v18 }
 0x130   :  { %v517_v25 = vsub.s32 4294967266, %v512_v28  ;;  %v513_v40 = vsub.s32 32, %v512_v28  ;;  %v710_v41 = vshll.u32 %v2197_v12, 30  ;;  %v566_v46 = vor.u32 %v565_v23, %v564_v22 }
 0x131   :  { %v569_v49 = vor.u32 %v568_v3, %v567_v43  ;;  %v573_v50 = vshll.u32 %v1830_v29, %v558_v59  ;;  %v574_v20 = vshrl.u32 %v1834_v39, %v559_v18  ;;  %v418_v51 = vand.u32 2147483647, %v417_v7  ;;  %v211_v7 = vpop.permute.xlu1 %210 }
 0x132   :  { %v518_v45 = vadd.s32 127, %v517_v25  ;;  %v2207_v48 = vsub.s32 %v707_v1, %v710_v41  ;;  %v572_v9 = vor.u32 %v571_v47, %v570_v44  ;;  %v857_v10 = vshrl.u32 %v856_v24, 23 }
 0x133   :  { %v514_v62 = vshll.u32 %v2158_v35, %v512_v28  ;;  %v560_v55 = vshrl.u32 %v1831_v32, %v559_v18  ;;  %v575_v56 = vor.u32 %v574_v20, %v573_v50  ;;  %v515_v60 = vshrl.u32 %v497_v6, %v513_v40 }
 0x134   :  { %v519_v52 = vshll.u32 %v518_v45, 23  ;;  %v713_v54 = vsub.s32 0, %v2207_v48  ;;  %vm576_vm9 = vcmp.lt.s32.totalorder %v2193_v19, 1  ;;  %vm578_vm11 = vcmp.lt.s32.totalorder %v2193_v19, 3 }
 0x135   :  { %vm579_vm12 = vcmp.lt.s32.totalorder %v2193_v19, 4  ;;  %v584_v5 = vsel %vm576_vm9, %v563_v42, %v566_v46  ;;  %vm577_vm13 = vcmp.lt.s32.totalorder %v2193_v19, 2  ;;  %v588_v18 = vsel %vm576_vm9, %v566_v46, %v569_v49 }
 0x136   :  { %v1594_v59 = vmin.u32 %v713_v54, %v2207_v48  ;;  %v581_v1 = vsel %vm579_vm12, %v569_v49, 2102212464  ;;  %v585_v11 = vsel %vm579_vm12, %v572_v9, 920167782  ;;  %v520_v15 = vor.u32 4788187, %v519_v52 }
 0x137   :  { %v586_v35 = vsel %vm578_vm11, %v569_v49, %v585_v11  ;;  %v580_v6 = vsel %vm576_vm9, %v560_v55, %v563_v42  ;;  %v589_v23 = vsel %vm579_vm12, %v575_v56, 1326507024  ;;  %v582_v28 = vsel %vm578_vm11, %v566_v46, %v581_v1 }
 0x138   :  { %v715_v24 = vclz %v1594_v59  ;;  %v587_v21 = vsel %vm577_vm13, %v584_v5, %v586_v35  ;;  %v590_v3 = vsel %vm578_vm11, %v572_v9, %v589_v23  ;;  %v1601_v41 = vadd.s32 4294967169, %v857_v10 }
 0x139   :  { %v2228_v25 = vmul.u32.u64.low %v2189_v61, %v587_v21  ;;  %v2229_v31 = vmul.u32.u64.high %v2189_v61, %v587_v21, %v2228_v25  ;;  %v591_v40 = vsel %vm577_vm13, %v588_v18, %v590_v3  ;;  %v860_v43 = vand.u32 8388607, %v853_v17 }
 0x13a   :  { %v1595_v22 = vadd.s32 4294967294, %v715_v24  ;;  %v516_v44 = vor.u32 %v515_v60, %v514_v62  ;;  %v703_v45 = vadd.s32 %v2161_v37, %v2156_v30  ;;  %v2242_v47 = vmul.f32 %v420_v8, %v418_v51  ;;  %v219_v8 = vpop.permute.xlu1 %218 }
 0x13b   :  { %v2239_v42 = vmul.u32.u64.low %v2189_v61, %v591_v40  ;;  %v2240_v46 = vmul.u32.u64.high %v2189_v61, %v591_v40, %v2239_v42  ;;  %v583_v49 = vsel %vm577_vm13, %v580_v6, %v582_v28  ;;  %v863_v50 = vadd.s32 1, %v1601_v41 }
 0x13c   :  { %vm1596_vm14 = vcmp.lt.s32.totalorder %v1595_v22, 0  ;;  %v521_v20 = vand.u32 2147483647, %v520_v15  ;;  %v602_v9 = vadd.s32 1, %v2229_v31  ;;  %v2250_v10 = vmul.f32 %v1933_v14, %v211_v7 }
 0x13d   :  { %v2246_v52 = vsel %vm1596_vm14, 0, %v1595_v22  ;;  %v861_v62 = vor.u32 8388608, %v860_v43  ;;  %vm864_vm15 = vcmp.gt.s32.totalorder %v863_v50, 0  ;;  %v523_v51 = vcvt.s32.f32 %v516_v44 }
 0x13e   :  { %v719_v30 = vsub.s32 32, %v2246_v52  ;;  %v723_v37 = vsub.s32 4294967266, %v2246_v52  ;;  %v599_v19 = vmul.u32 %v2189_v61, %v583_v49  ;;  %vm601_vm0 = vc.u32 %v2240_v46, %v2228_v25 }
 0x13f   :  { %v865_v54 = vsel %vm864_vm15, %v863_v50, 0  ;;  %v422_v55 = vxor.u32 2147483648, %v2242_v47  ;;  %v603_v60 = vsel %vm601_vm0, %v602_v9, %v2229_v31  ;;  %v2259_v1 = vmul.f32 %v523_v51, %v521_v20 }
 0x140   :  { %v724_v56 = vadd.s32 127, %v723_v37  ;;  %v866_v59 = vshrl.u32 %v865_v54, 5  ;;  %v604_v5 = vadd.s32 %v603_v60, %v599_v19  ;;  %v867_v11 = vand.u32 31, %v865_v54 }
 0x141   :  { %v2262_v15 = vmul.f32 %v1933_v14, %v219_v8  ;;  %v720_v61 = vshll.u32 %v2207_v48, %v2246_v52  ;;  %v721_v35 = vshrl.u32 %v703_v45, %v719_v30  ;;  %v2266_v18 = vshll.u32 %v861_v62, 8 }
 0x142   :  { %v750_v24 = vand.u32 2147483647, %v2250_v10  ;;  %v725_v6 = vshll.u32 %v724_v56, 23  ;;  %v605_v21 = vadd.s32 536870912, %v604_v5  ;;  %v868_v23 = vsub.s32 32, %v867_v11 }
 0x143   :  { %v753_v7 = vand.u32 2139095040, %v2250_v10  ;;  %v870_v28 = vshll.u32 %v1831_v32, %v867_v11  ;;  %v873_v3 = vshll.u32 %v1832_v34, %v867_v11  ;;  %vm885_vm2 = vcmp.lt.s32.totalorder %v866_v59, 1 }
 0x144   :  { %vm886_vm3 = vcmp.lt.s32.totalorder %v866_v59, 2  ;;  %v2272_v14 = vshrl.u32 %v605_v21, 30  ;;  %v871_v48 = vshrl.u32 %v1832_v34, %v868_v23  ;;  %v874_v31 = vshrl.u32 %v1833_v36, %v868_v23 }
 0x145   :  { %v876_v22 = vshll.u32 %v1833_v36, %v867_v11  ;;  %v877_v40 = vshrl.u32 %v1829_v27, %v868_v23  ;;  %v879_v41 = vshll.u32 %v1829_v27, %v867_v11  ;;  %v880_v43 = vshrl.u32 %v1830_v29, %v868_v23 }
 0x146   :  { %v882_v44 = vshll.u32 %v1830_v29, %v867_v11  ;;  %vm340_vm4 = vcmp.lt.s32.totalorder %v1977_v57, 0  ;;  %v607_v45 = vshll.u32 %v2272_v14, 30  ;;  %v872_v42 = vor.u32 %v871_v48, %v870_v28 }
 0x147   :  { %v875_v49 = vor.u32 %v874_v31, %v873_v3  ;;  %v883_v50 = vshrl.u32 %v1834_v39, %v868_v23  ;;  %v726_v20 = vor.u32 4788187, %v725_v6  ;;  %v869_v52 = vshrl.u32 %v1831_v32, %v868_v23 }
 0x148   :  { %v878_v9 = vor.u32 %v877_v40, %v876_v22  ;;  %v881_v30 = vor.u32 %v880_v43, %v879_v41  ;;  %v2285_v37 = vsub.s32 %v604_v5, %v607_v45  ;;  %vm887_vm5 = vcmp.lt.s32.totalorder %v866_v59, 3 }
 0x149   :  { %v884_v62 = vor.u32 %v883_v50, %v882_v44  ;;  %vm888_vm6 = vcmp.lt.s32.totalorder %v866_v59, 4  ;;  %v889_v8 = vsel %vm885_vm2, %v869_v52, %v872_v42  ;;  %v893_v19 = vsel %vm885_vm2, %v872_v42, %v875_v49 }
 0x14a   :  { %v890_v51 = vsel %vm888_vm6, %v878_v9, 2102212464  ;;  %v894_v54 = vsel %vm888_vm6, %v881_v30, 920167782  ;;  %v610_v56 = vsub.s32 0, %v2285_v37  ;;  %v897_v6 = vsel %vm885_vm2, %v875_v49, %v878_v9 }
 0x14b   :  { %v891_v60 = vsel %vm887_vm5, %v875_v49, %v890_v51  ;;  %v895_v11 = vsel %vm887_vm5, %v878_v9, %v894_v54  ;;  %v722_v21 = vor.u32 %v721_v35, %v720_v61  ;;  %v727_v5 = vand.u32 2147483647, %v726_v20 }
 0x14c   :  { %v896_v23 = vsel %vm886_vm3, %v893_v19, %v895_v11  ;;  %v898_v28 = vsel %vm888_vm6, %v884_v62, 1326507024  ;;  %vm443_vm7 = vcmp.lt.s32.totalorder %v1984_v63, 0  ;;  %v1590_v3 = vmin.u32 %v610_v56, %v2285_v37 }
 0x14d   :  { %v899_v48 = vsel %vm887_vm5, %v881_v30, %v898_v28  ;;  %v2298_v31 = vmul.u32.u64.low %v2266_v18, %v896_v23  ;;  %v2299_v22 = vmul.u32.u64.high %v2266_v18, %v896_v23, %v2298_v31  ;;  %v892_v40 = vsel %vm886_vm3, %v889_v8, %v891_v60 }
 0x14e   :  { %v900_v41 = vsel %vm886_vm3, %v897_v6, %v899_v48  ;;  %v754_v61 = vshrl.u32 %v753_v7, 23  ;;  %v757_v35 = vand.u32 8388607, %v750_v24  ;;  %vm2308_vm8 = vcmp.le.f32.partialorder %v338_v58, 0.7853982 }
 0x14f   :  { %v612_v44 = vclz %v1590_v3  ;;  %v2313_v45 = vmul.u32.u64.low %v2266_v18, %v900_v41  ;;  %v2314_v42 = vmul.u32.u64.high %v2266_v18, %v900_v41, %v2313_v45  ;;  %v956_v49 = vand.u32 2147483647, %v2262_v15 }
 0x150   :  { %v423_v59 = vsel %vm340_vm4, %v422_v55, %v2242_v47  ;;  %v729_v7 = vcvt.s32.f32 %v722_v21  ;;  %v1597_v50 = vadd.s32 4294967169, %v754_v61  ;;  %v959_v58 = vand.u32 2139095040, %v2262_v15 }
 0x151   :  { %v525_v20 = vxor.u32 2147483648, %v2259_v1  ;;  %v600_v52 = vadd.s32 %v2228_v25, %v2240_v46  ;;  %v1591_v9 = vadd.s32 4294967294, %v612_v44  ;;  %v911_v30 = vadd.s32 1, %v2299_v22 }
 0x152   :  { %v2327_v62 = vmul.f32 %v729_v7, %v727_v5  ;;  %v908_v8 = vmul.u32 %v2266_v18, %v892_v40  ;;  %v760_v51 = vadd.s32 1, %v1597_v50  ;;  %v960_v19 = vshrl.u32 %v959_v58, 23 }
 0x153   :  { %vm1592_vm9 = vcmp.lt.s32.totalorder %v1591_v9, 0  ;;  %vm910_vm11 = vc.u32 %v2314_v42, %v2298_v31  ;;  %v758_v47 = vor.u32 8388608, %v757_v35  ;;  %v2334_v55 = vand.u32 8388607, %v956_v49 }
 0x154   :  { %v615_v54 = vsel %vm1592_vm9, 0, %v1591_v9  ;;  %v912_v25 = vsel %vm910_vm11, %v911_v30, %v2299_v22  ;;  %vm761_vm12 = vcmp.gt.s32.totalorder %v760_v51, 0  ;;  %v1605_v46 = vadd.s32 4294967169, %v960_v19 }
 0x155   :  { %v616_v56 = vsub.s32 32, %v615_v54  ;;  %v620_v60 = vsub.s32 4294967266, %v615_v54  ;;  %v913_v11 = vadd.s32 %v912_v25, %v908_v8  ;;  %v424_v18 = vsub.s32 4, %v2067_v16 }
 0x156   :  { %v2341_v6 = vsel %vm443_vm7, %v525_v20, %v2259_v1  ;;  %v731_v21 = vxor.u32 2147483648, %v2327_v62  ;;  %v762_v5 = vsel %vm761_vm12, %v760_v51, 0  ;;  %v966_v23 = vadd.s32 1, %v1605_v46 }
 0x157   :  { %v618_v28 = vshrl.u32 %v600_v52, %v616_v56  ;;  %v621_v3 = vadd.s32 127, %v620_v60  ;;  %v914_v48 = vadd.s32 536870912, %v913_v11  ;;  %v2347_v22 = vsel %vm2308_vm8, %v1977_v57, %v423_v59 }
 0x158   :  { %v617_v40 = vshll.u32 %v2285_v37, %v615_v54  ;;  %v764_v41 = vand.u32 31, %v762_v5  ;;  %v2350_v61 = vshll.u32 %v758_v47, 8  ;;  %v964_v1 = vor.u32 8388608, %v2334_v55 }
 0x159   :  { %v622_v35 = vshll.u32 %v621_v3, 23  ;;  %v2353_v44 = vshrl.u32 %v914_v48, 30  ;;  %v763_v45 = vshrl.u32 %v762_v5, 5  ;;  %v2358_v7 = vsel %vm340_vm4, %v424_v18, %v2067_v16 }
 0x15a   :  { %v619_v50 = vor.u32 %v618_v28, %v617_v40  ;;  %v765_v58 = vsub.s32 32, %v764_v41  ;;  %vm967_vm13 = vcmp.gt.s32.totalorder %v966_v23, 0  ;;  %1773 = vcosq.f32 %v2347_v22 }
 0x15b   :  { %v916_v37 = vshll.u32 %v2353_v44, 30  ;;  %v767_v59 = vshll.u32 %v1831_v32, %v764_v41  ;;  %v770_v20 = vshll.u32 %v1832_v34, %v764_v41  ;;  %v773_v52 = vshll.u32 %v1833_v36, %v764_v41 }
 0x15c   :  { %v623_v9 = vor.u32 4788187, %v622_v35  ;;  %v768_v30 = vshrl.u32 %v1832_v34, %v765_v58  ;;  %v771_v8 = vshrl.u32 %v1833_v36, %v765_v58  ;;  %v774_v16 = vshrl.u32 %v1829_v27, %v765_v58 }
 0x15d   :  { %v2368_v51 = vsub.s32 %v913_v11, %v916_v37  ;;  %v776_v19 = vshll.u32 %v1829_v27, %v764_v41  ;;  %v777_v47 = vshrl.u32 %v1830_v29, %v765_v58  ;;  %v779_v55 = vshll.u32 %v1830_v29, %v764_v41 }
 0x15e   :  { %v769_v54 = vor.u32 %v768_v30, %v767_v59  ;;  %v772_v25 = vor.u32 %v771_v8, %v770_v20  ;;  %v775_v46 = vor.u32 %v774_v16, %v773_v52  ;;  %v780_v56 = vshrl.u32 %v1834_v39, %v765_v58 }
 0x15f   :  { %v626_v60 = vcvt.s32.f32 %v619_v50  ;;  %v919_v18 = vsub.s32 0, %v2368_v51  ;;  %v778_v5 = vor.u32 %v777_v47, %v776_v19  ;;  %vm782_vm14 = vcmp.lt.s32.totalorder %v763_v45, 1 }
 0x160   :  { %v624_v28 = vand.u32 2147483647, %v623_v9  ;;  %v766_v11 = vshrl.u32 %v1831_v32, %v765_v58  ;;  %v781_v3 = vor.u32 %v780_v56, %v779_v55  ;;  %vm785_vm15 = vcmp.lt.s32.totalorder %v763_v45, 4 }
 0x161   :  { %v1602_v48 = vmin.u32 %v919_v18, %v2368_v51  ;;  %vm783_vm0 = vcmp.lt.s32.totalorder %v763_v45, 2  ;;  %v787_v40 = vsel %vm785_vm15, %v775_v46, 2102212464  ;;  %v790_v41 = vsel %vm782_vm14, %v769_v54, %v772_v25 }
 0x162   :  { %vm784_vm2 = vcmp.lt.s32.totalorder %v763_v45, 3  ;;  %v791_v35 = vsel %vm785_vm15, %v778_v5, 920167782  ;;  %v794_v37 = vsel %vm782_vm14, %v772_v25, %v775_v46  ;;  %v795_v59 = vsel %vm785_vm15, %v781_v3, 1326507024 }
 0x163   :  { %v921_v20 = vclz %v1602_v48  ;;  %v786_v50 = vsel %vm782_vm14, %v766_v11, %v769_v54  ;;  %v788_v52 = vsel %vm784_vm2, %v772_v25, %v787_v40  ;;  %v792_v30 = vsel %vm784_vm2, %v775_v46, %v791_v35 }
 0x164   :  { %v2377_v8 = vmul.f32 %v626_v60, %v624_v28  ;;  %v793_v9 = vsel %vm783_vm0, %v790_v41, %v792_v30  ;;  %v796_v58 = vsel %vm784_vm2, %v778_v5, %v795_v59  ;;  %v968_v16 = vsel %vm967_vm13, %v966_v23, 0 }
 0x165   :  { %v1603_v19 = vadd.s32 4294967294, %v921_v20  ;;  %v797_v47 = vsel %vm783_vm0, %v794_v37, %v796_v58  ;;  %v2383_v55 = vmul.u32.u64.low %v2350_v61, %v793_v9  ;;  %v2384_v56 = vmul.u32.u64.high %v2350_v61, %v793_v9, %v2383_v55 }
 0x166   :  { %v789_v18 = vsel %vm783_vm0, %v786_v50, %v788_v52  ;;  %v2389_v54 = vmul.u32.u64.low %v2350_v61, %v797_v47  ;;  %v2390_v25 = vmul.u32.u64.high %v2350_v61, %v797_v47, %v2389_v54  ;;  %v970_v46 = vand.u32 31, %v968_v16 }
 0x167   :  { %v2392_v60 = vpop.eup %1773  ;;  %v909_v23 = vadd.s32 %v2298_v31, %v2314_v42  ;;  %vm1604_vm3 = vcmp.lt.s32.totalorder %v1603_v19, 0  ;;  %v2396_v5 = vshll.u32 %v964_v1, 8  ;;  %v427_v28 = vsel %vm2308_vm8, 0, %v2358_v7 }
 0x168   :  { %v628_v45 = vxor.u32 2147483648, %v2377_v8  ;;  %v924_v11 = vsel %vm1604_vm3, 0, %v1603_v19  ;;  %v971_v3 = vsub.s32 32, %v970_v46  ;;  %1775 = vsinq.f32 %v2347_v22 }
 0x169   :  { %v925_v48 = vsub.s32 32, %v924_v11  ;;  %v929_v40 = vsub.s32 4294967266, %v924_v11  ;;  %v805_v41 = vmul.u32 %v2350_v61, %v789_v18  ;;  %v808_v35 = vadd.s32 1, %v2384_v56 }
 0x16a   :  { %vm807_vm4 = vc.u32 %v2390_v25, %v2383_v55  ;;  %v969_v31 = vshrl.u32 %v968_v16, 5  ;;  %v973_v42 = vshll.u32 %v1831_v32, %v970_v46  ;;  %v974_v43 = vshrl.u32 %v1832_v34, %v971_v3 }
 0x16b   :  { %v930_v1 = vadd.s32 127, %v929_v40  ;;  %v809_v7 = vsel %vm807_vm4, %v808_v35, %v2384_v56  ;;  %v976_v37 = vshll.u32 %v1832_v34, %v970_v46  ;;  %v977_v22 = vshrl.u32 %v1833_v36, %v971_v3 }
 0x16c   :  { %v927_v59 = vshrl.u32 %v909_v23, %v925_v48  ;;  %v810_v20 = vadd.s32 %v809_v7, %v805_v41  ;;  %v979_v61 = vshll.u32 %v1833_v36, %v970_v46  ;;  %v980_v50 = vshrl.u32 %v1829_v27, %v971_v3 }
 0x16d   :  { %v926_v52 = vshll.u32 %v2368_v51, %v924_v11  ;;  %v931_v30 = vshll.u32 %v930_v1, 23  ;;  %v975_v9 = vor.u32 %v974_v43, %v973_v42  ;;  %v978_v58 = vor.u32 %v977_v22, %v976_v37 }
 0x16e   :  { %v811_v16 = vadd.s32 536870912, %v810_v20  ;;  %v981_v19 = vor.u32 %v980_v50, %v979_v61  ;;  %v982_v47 = vshll.u32 %v1829_v27, %v970_v46  ;;  %v983_v56 = vshrl.u32 %v1830_v29, %v971_v3 }
 0x16f   :  { %v972_v34 = vshrl.u32 %v1831_v32, %v971_v3  ;;  %v985_v18 = vshll.u32 %v1830_v29, %v970_v46  ;;  %v986_v54 = vshrl.u32 %v1834_v39, %v971_v3  ;;  %v431_v36 = vand.u32 3, %v427_v28 }
 0x170   :  { %v928_v23 = vor.u32 %v927_v59, %v926_v52  ;;  %v932_v48 = vor.u32 4788187, %v931_v30  ;;  %v2420_v40 = vshrl.u32 %v811_v16, 30  ;;  %v984_v51 = vor.u32 %v983_v56, %v982_v47 }
 0x171   :  { %v987_v11 = vor.u32 %v986_v54, %v985_v18  ;;  %vm988_vm5 = vcmp.lt.s32.totalorder %v969_v31, 1  ;;  %vm990_vm6 = vcmp.lt.s32.totalorder %v969_v31, 3  ;;  %vm991_vm8 = vcmp.lt.s32.totalorder %v969_v31, 4 }
 0x172   :  { %vm546_vm9 = vcmp.lt.s32.totalorder %v2000_v13, 0  ;;  %v813_v27 = vshll.u32 %v2420_v40, 30  ;;  %v993_v41 = vsel %vm991_vm8, %v981_v19, 2102212464  ;;  %v996_v32 = vsel %vm988_vm5, %v975_v9, %v978_v58 }
 0x173   :  { %v997_v35 = vsel %vm991_vm8, %v984_v51, 920167782  ;;  %vm989_vm11 = vcmp.lt.s32.totalorder %v969_v31, 2  ;;  %v992_v29 = vsel %vm988_vm5, %v972_v34, %v975_v9  ;;  %v1000_v46 = vsel %vm988_vm5, %v978_v58, %v981_v19 }
 0x174   :  { %v998_v39 = vsel %vm990_vm6, %v981_v19, %v997_v35  ;;  %vm430_vm12 = vweird.f32 %v1977_v57  ;;  %v2426_v28 = vsub.s32 %v810_v20, %v813_v27  ;;  %v994_v3 = vsel %vm990_vm6, %v978_v58, %v993_v41 }
 0x175   :  { %v999_v42 = vsel %vm989_vm11, %v996_v32, %v998_v39  ;;  %v1001_v43 = vsel %vm991_vm8, %v987_v11, 1326507024  ;;  %v1776_v1 = vpop.eup %1775  ;;  %v437_v59 = vxor.u32 2147483648, %v2392_v60  ;;  %v933_v61 = vand.u32 2147483647, %v932_v48 }
 0x176   :  { %v1002_v7 = vsel %vm990_vm6, %v984_v51, %v1001_v43  ;;  %v2432_v37 = vmul.u32.u64.low %v2396_v5, %v999_v42  ;;  %v2433_v22 = vmul.u32.u64.high %v2396_v5, %v999_v42, %v2432_v37  ;;  %v935_v50 = vcvt.s32.f32 %v928_v23 }
 0x177   :  { %v816_v20 = vsub.s32 0, %v2426_v28  ;;  %v1003_v52 = vsel %vm989_vm11, %v1000_v46, %v1002_v7  ;;  %v995_v30 = vsel %vm989_vm11, %v992_v29, %v994_v3  ;;  %vm433_vm13 = vcmp.eq.s32.totalorder %v431_v36, 0 }
 0x178   :  { %v2441_v9 = vmul.u32.u64.low %v2396_v5, %v1003_v52  ;;  %v2442_v58 = vmul.u32.u64.high %v2396_v5, %v1003_v52, %v2441_v9  ;;  %v434_v19 = vxor.u32 2147483648, %v1776_v1  ;;  %vm436_vm14 = vcmp.eq.s32.totalorder %v431_v36, 2 }
 0x179   :  { %v1598_v16 = vmin.u32 %v816_v20, %v2426_v28  ;;  %vm2447_vm15 = vcmp.le.f32.partialorder %v441_v2, 0.7853982  ;;  %v1014_v56 = vadd.s32 1, %v2433_v22  ;;  %v438_v34 = vsel %vm436_vm14, %v437_v59, %v1776_v1 }
 0x17a   :  { %v527_v31 = vsub.s32 4, %v2126_v33  ;;  %v529_v18 = vsel %vm2447_vm15, %v1984_v63, %v2341_v6  ;;  %vm432_vm0 = vcmp.lt.s32.totalorder %v431_v36, 2  ;;  %v435_v23 = vsel %vm433_vm13, %v2392_v60, %v434_v19 }
 0x17b   :  { %v818_v54 = vclz %v1598_v16  ;;  %1777 = vcosq.f32 %v529_v18  ;;  %v629_v2 = vsel %vm546_vm9, %v628_v45, %v2377_v8  ;;  %v1011_v48 = vmul.u32 %v2396_v5, %v995_v30 }
 0x17c   :  { %vm1013_vm2 = vc.u32 %v2442_v58, %v2432_v37  ;;  %v439_v51 = vsel %vm432_vm0, %v435_v23, %v438_v34  ;;  %v936_v11 = vmul.f32 %v935_v50, %v933_v61  ;;  %v528_v8 = vsel %vm443_vm7, %v527_v31, %v2126_v33 }
 0x17d   :  { %v1599_v27 = vadd.s32 4294967294, %v818_v54  ;;  %v1015_v6 = vsel %vm1013_vm2, %v1014_v56, %v2433_v22  ;;  %v440_v60 = vsel %vm430_vm12, nan, %v439_v51  ;;  %1779 = vsinq.f32 %v529_v18 }
 0x17e   :  { %v1016_v36 = vadd.s32 %v1015_v6, %v1011_v48  ;;  %1688 = vmatmul.mubr.msk.f32.vlgmr.msra.gmra.mxu1 %vm1074_vm1, %v440_v60  ;;  %vm2475_vm3 = vcmp.le.f32.partialorder %v544_v26, 0.7853982  ;;  %vm649_vm4 = vcmp.lt.s32.totalorder %v1987_v0, 0  ;;  %v630_v57 = vsub.s32 4, %v2272_v14 }
 0x17f   :  { %vm1600_vm5 = vcmp.lt.s32.totalorder %v1599_v27, 0  ;;  %v632_v45 = vsel %vm2475_vm3, %v2000_v13, %v629_v2  ;;  %v732_v33 = vsel %vm649_vm4, %v731_v21, %v2327_v62  ;;  %v806_v26 = vadd.s32 %v2383_v55, %v2390_v25 }
 0x180   :  { %v821_v41 = vsel %vm1600_vm5, 0, %v1599_v27  ;;  %v1017_v32 = vadd.s32 536870912, %v1016_v36  ;;  %v937_v35 = vxor.u32 2147483648, %v936_v11  ;;  %v530_v46 = vsel %vm2447_vm15, 0, %v528_v8 }
 0x181   :  { %v822_v29 = vsub.s32 32, %v821_v41  ;;  %v826_v39 = vsub.s32 4294967266, %v821_v41  ;;  %v823_v3 = vshll.u32 %v2426_v28, %v821_v41  ;;  %v631_v43 = vsel %vm546_vm9, %v630_v57, %v2272_v14 }
 0x182   :  { %v2494_v42 = vshrl.u32 %v1017_v32, 30  ;;  %1781 = vcosq.f32 %v632_v45  ;;  %vm2501_vm7 = vcmp.le.f32.partialorder %v647_v4, 0.7853982  ;;  %v633_v28 = vsel %vm2475_vm3, 0, %v631_v43  ;;  %v145_v43 = vpop.xlane.xlu0 %144 }
 0x183   :  { %v824_v62 = vshrl.u32 %v806_v26, %v822_v29  ;;  %v827_v21 = vadd.s32 127, %v826_v39  ;;  %1783 = vsinq.f32 %v632_v45  ;;  %v733_v1 = vsub.s32 4, %v2197_v12 }
 0x184   :  { %v1019_v25 = vshll.u32 %v2494_v42, 30  ;;  %v735_v14 = vsel %vm2501_vm7, %v1987_v0, %v732_v33  ;;  %v534_v4 = vand.u32 3, %v530_v46  ;;  %vm855_vm6 = vcmp.lt.s32.totalorder %v2181_v53, 0 }
 0x185   :  { %v825_v7 = vor.u32 %v824_v62, %v823_v3  ;;  %v828_v22 = vshll.u32 %v827_v21, 23  ;;  %1785 = vcosq.f32 %v735_v14  ;;  %v2515_v50 = vand.u32 3, %v633_v28 }
 0x186   :  { %v2512_v59 = vsub.s32 %v1016_v36, %v1019_v25  ;;  %1787 = vsinq.f32 %v735_v14  ;;  %v938_v52 = vsel %vm855_vm6, %v937_v35, %v936_v11  ;;  %vm752_vm8 = vcmp.lt.s32.totalorder %v2250_v10, 0 }
 0x187   :  { %v829_v61 = vor.u32 4788187, %v828_v22  ;;  %v734_v9 = vsel %vm649_vm4, %v733_v1, %v2197_v12  ;;  %v832_v19 = vcvt.s32.f32 %v825_v7  ;;  %vm533_vm9 = vweird.f32 %v1984_v63 }
 0x188   :  { %v1778_v20 = vpop.eup %1777  ;;  %v1022_v30 = vsub.s32 0, %v2512_v59  ;;  %v1012_v56 = vadd.s32 %v2432_v37, %v2442_v58  ;;  %vm535_vm11 = vcmp.lt.s32.totalorder %v534_v4, 2  ;;  %vm536_vm12 = vcmp.eq.s32.totalorder %v534_v4, 0 }
 0x189   :  { %v830_v16 = vand.u32 2147483647, %v829_v61  ;;  %v540_v47 = vxor.u32 2147483648, %v1778_v20  ;;  %vm539_vm13 = vcmp.eq.s32.totalorder %v534_v4, 2  ;;  %vm638_vm14 = vcmp.lt.s32.totalorder %v2515_v50, 2 }
 0x18a   :  { %v1606_v34 = vmin.u32 %v1022_v30, %v2512_v59  ;;  %v1780_v31 = vpop.eup %1779  ;;  %v736_v12 = vsel %vm2501_vm7, 0, %v734_v9  ;;  %vm636_vm15 = vweird.f32 %v2000_v13  ;;  %vm2534_vm0 = vcmp.le.f32.partialorder %v853_v17, 0.7853982 }
 0x18b   :  { %v833_v18 = vmul.f32 %v832_v19, %v830_v16  ;;  %v537_v23 = vxor.u32 2147483648, %v1780_v31  ;;  %v541_v2 = vsel %vm539_vm13, %v540_v47, %v1780_v31  ;;  %vm639_vm2 = vcmp.eq.s32.totalorder %v2515_v50, 0 }
 0x18c   :  { %v1024_v54 = vclz %v1606_v34  ;;  %vm642_vm3 = vcmp.eq.s32.totalorder %v2515_v50, 2  ;;  %v941_v48 = vsel %vm2534_vm0, %v2181_v53, %v938_v52  ;;  %v740_v27 = vand.u32 3, %v736_v12 }
 0x18d   :  { %v834_v58 = vxor.u32 2147483648, %v833_v18  ;;  %v538_v11 = vsel %vm536_vm12, %v1778_v20, %v537_v23  ;;  %1789 = vcosq.f32 %v941_v48  ;;  %vm2549_vm4 = vcmp.le.f32.partialorder %v750_v24, 0.7853982 }
 0x18e   :  { %v1607_v51 = vadd.s32 4294967294, %v1024_v54  ;;  %v542_v60 = vsel %vm535_vm11, %v538_v11, %v541_v2  ;;  %v836_v8 = vsub.s32 4, %v2420_v40  ;;  %v939_v24 = vsub.s32 4, %v2353_v44 }
 0x18f   :  { %v1782_v6 = vpop.eup %1781  ;;  %v835_v17 = vsel %vm752_vm8, %v834_v58, %v833_v18  ;;  %v543_v57 = vsel %vm533_vm9, nan, %v542_v60  ;;  %vm745_vm7 = vcmp.eq.s32.totalorder %v740_v27, 2  ;;  %vm742_vm9 = vcmp.eq.s32.totalorder %v740_v27, 0 }
 0x190   :  { %v1784_v5 = vpop.eup %1783  ;;  %vm1608_vm5 = vcmp.lt.s32.totalorder %v1607_v51, 0  ;;  %v643_v45 = vxor.u32 2147483648, %v1782_v6  ;;  %v838_v33 = vsel %vm2549_vm4, %v2250_v10, %v835_v17  ;;  %1690 = vmatprep.mubr.msk.f32.mxu1 %vm1074_vm1, %v543_v57  ;;  %v837_v7 = vsel %vm752_vm8, %v836_v8, %v2420_v40 }
 0x191   :  { %v1027_v26 = vsel %vm1608_vm5, 0, %v1607_v51  ;;  %v640_v41 = vxor.u32 2147483648, %v1784_v5  ;;  %1791 = vcosq.f32 %v838_v33  ;;  %v147_v4 = vmul.f32 0.03125, %v145_v43 }
 0x192   :  { %v1786_v32 = vpop.eup %1785  ;;  %v1028_v35 = vsub.s32 32, %v1027_v26  ;;  %v1032_v29 = vsub.s32 4294967266, %v1027_v26  ;;  %v644_v39 = vsel %vm642_vm3, %v643_v45, %v1784_v5  ;;  %v1029_v63 = vshll.u32 %v2512_v59, %v1027_v26 }
 0x193   :  { %v641_v46 = vsel %vm639_vm2, %v1782_v6, %v640_v41  ;;  %v746_v3 = vxor.u32 2147483648, %v1786_v32  ;;  %1793 = vsinq.f32 %v838_v33  ;;  %v1788_v62 = vpop.eup %1787  ;;  %vm741_vm11 = vcmp.lt.s32.totalorder %v740_v27, 2 }
 0x194   :  { %v1030_v21 = vshrl.u32 %v1012_v56, %v1028_v35  ;;  %v1033_v55 = vadd.s32 127, %v1032_v29  ;;  %v645_v25 = vsel %vm638_vm14, %v641_v46, %v644_v39  ;;  %1795 = vsinq.f32 %v941_v48  ;;  %v1221_v46 = vld [vmem:[%s2752_s9 + $0x8] sm:$0xff] }
 0x195   :  { %v646_v28 = vsel %vm636_vm15, nan, %v645_v25  ;;  %v743_v1 = vxor.u32 2147483648, %v1788_v62  ;;  %v747_v14 = vsel %vm745_vm7, %v746_v3, %v1788_v62  ;;  %v940_v50 = vsel %vm855_vm6, %v939_v24, %v2353_v44 }
 0x196   :  { %v1031_v22 = vor.u32 %v1030_v21, %v1029_v63  ;;  %v1034_v59 = vshll.u32 %v1033_v55, 23  ;;  %1691 = vmatmul.mubr.msk.f32.gmra.mxu1 %vm1074_vm1, %v646_v28  ;;  %vm739_vm12 = vweird.f32 %v1987_v0  ;;  %v2579_v52 = vsub.f32 %v1967_v38, %v147_v4  ;;  %v1222_v63 = vld [vmem:[%s2752_s9 + $0x10] sm:$0xff]  ;;  %v1574_v55 = vld [vmem:[%s2753_s5] ss:$0 sm:$0xff] }
 0x197   :  { %v744_v61 = vsel %vm742_vm9, %v1786_v32, %v743_v1  ;;  %v839_v30 = vsel %vm2549_vm4, 0, %v837_v7  ;;  %v942_v19 = vsel %vm2534_vm0, 0, %v940_v50  ;;  %vm958_vm6 = vcmp.lt.s32.totalorder %v2262_v15, 0  ;;  %v1575_v1 = vld [vmem:[%s2754_s6] ss:$0 sm:$0xff] }
 0x198   :  { %v1035_v13 = vor.u32 4788187, %v1034_v59  ;;  %v748_v20 = vsel %vm741_vm11, %v744_v61, %v747_v14  ;;  %v1038_v16 = vcvt.s32.f32 %v1031_v22  ;;  %v149_v44 = vmul.f32 %v2579_v52, %v2579_v52  ;;  %v1609_v14 = vld [vmem:[%s2755_s8] ss:$0 sm:$0xff] }
 0x199   :  { %v749_v40 = vsel %vm739_vm12, nan, %v748_v20  ;;  %v843_v56 = vand.u32 3, %v839_v30  ;;  %v946_v34 = vand.u32 3, %v942_v19  ;;  %vm2594_vm14 = vcmp.le.f32.partialorder %v956_v49, 0.7853982 }
 0x19a   :  { %v1036_v9 = vand.u32 2147483647, %v1035_v13  ;;  %1693 = vmatprep.mubr.msk.f32.mxu1 %vm1074_vm1, %v749_v40  ;;  %v1790_v47 = vpop.eup %1789  ;;  %v150_v38 = vsel %vm142_vm10, %v149_v44, 0.0  ;;  %v1042_v60 = vsub.s32 4, %v2494_v42  ;;  %vm842_vm3 = vweird.f32 %v2250_v10 }
 0x19b   :  { %151 = vadd.xlane.f32.xlu1 %v150_v38  ;;  %v952_v12 = vxor.u32 2147483648, %v1790_v47  ;;  %vm844_vm8 = vcmp.lt.s32.totalorder %v843_v56, 2  ;;  %vm848_vm13 = vcmp.eq.s32.totalorder %v843_v56, 2  ;;  %vm951_vm15 = vcmp.eq.s32.totalorder %v946_v34, 2 }
 0x19c   :  { %v1039_v0 = vmul.f32 %v1038_v16, %v1036_v9  ;;  %vm845_vm0 = vcmp.eq.s32.totalorder %v843_v56, 0  ;;  %vm948_vm2 = vcmp.eq.s32.totalorder %v946_v34, 0  ;;  %vm947_vm4 = vcmp.lt.s32.totalorder %v946_v34, 2 }
 0x19d   :  { %vm945_vm5 = vweird.f32 %v2181_v53  ;;  %v1043_v45 = vsel %vm958_vm6, %v1042_v60, %v2494_v42  ;;  %vm1048_vm12 = vweird.f32 %v2262_v15  ;;  %v1223_v42 = vld [vmem:[%s2752_s9 + $0x18] sm:$0xff]  ;;  %v1618_v60 = vld [vmem:[%s2756_s10] ss:$0 sm:$0xff] }
 0x19e   :  { %v1792_v31 = vpop.eup %1791  ;;  %v1040_v18 = vxor.u32 2147483648, %v1039_v0  ;;  %v1045_v10 = vsel %vm2594_vm14, 0, %v1043_v45  ;;  %1699 = vmatprep.subr.mxu0 %v1223_v42 }
 0x19f   :  { %v849_v54 = vxor.u32 2147483648, %v1792_v31  ;;  %v1049_v33 = vand.u32 3, %v1045_v10  ;;  %1700 = vmatpush3.msra.mxu0 %v1223_v42 }
 0x1a0   :  { %v1794_v23 = vpop.eup %1793  ;;  %v1041_v2 = vsel %vm958_vm6, %v1040_v18, %v1039_v0  ;;  %1701 = vmatprep.subr.mxu0 %v1222_v63  ;;  %vm1553_vm6 = vcmask 15360  }
 0x1a1   :  { %v1796_v58 = vpop.eup %1795  ;;  %v846_v48 = vxor.u32 2147483648, %v1794_v23  ;;  %v850_v51 = vsel %vm848_vm13, %v849_v54, %v1794_v23  ;;  %v1044_v11 = vsel %vm2594_vm14, %v2262_v15, %v1041_v2  ;;  %vm1054_vm7 = vcmp.eq.s32.totalorder %v1049_v33, 2  ;;  %1702 = vmatpush3.msra.mxu0 %v1222_v63  ;;  %v1220_v15 = vld [vmem:[%s2752_s9] sm:$0xff] }
 0x1a2   :  { %v949_v27 = vxor.u32 2147483648, %v1796_v58  ;;  %v953_v6 = vsel %vm951_vm15, %v952_v12, %v1796_v58  ;;  %1797 = vcosq.f32 %v1044_v11  ;;  %vm1051_vm9 = vcmp.eq.s32.totalorder %v1049_v33, 0  ;;  %1703 = vmatprep.subr.mxu0 %v1221_v46 }
 0x1a3   :  { %v847_v17 = vsel %vm845_vm0, %v1792_v31, %v846_v48  ;;  %1799 = vsinq.f32 %v1044_v11  ;;  %vm1050_vm11 = vcmp.lt.s32.totalorder %v1049_v33, 2  ;;  %1704 = vmatpush3.msra.mxu0 %v1221_v46  ;;  %vm1559_vm13 = vcmask 39936  }
 0x1a4   :  { %v851_v49 = vsel %vm844_vm8, %v847_v17, %v850_v51  ;;  %v950_v36 = vsel %vm948_vm2, %v1790_v47, %v949_v27  ;;  %1705 = vmatprep.subr.mxu0 %v1220_v15  ;;  %vm1555_vm8 = vcmask 23552   ;;  %vm1561_vm14 = vcmask 48128  }
 0x1a5   :  { %v852_v8 = vsel %vm842_vm3, nan, %v851_v49  ;;  %v954_v5 = vsel %vm947_vm4, %v950_v36, %v953_v6  ;;  %1706 = vmatpush3.msra.mxu0 %v1220_v15  ;;  %vm1563_vm15 = vcmask 56320   ;;  %vm1565_vm0 = vcmask 64512  }
 0x1a6   :  { %1694 = vmatmul.mubr.msk.f32.gmra.mxu1 %vm1074_vm1, %v852_v8  ;;  %v955_v57 = vsel %vm945_vm5, nan, %v954_v5 }
 0x1a7   :  { %1696 = vmatprep.mubr.msk.f32.mxu1 %vm1074_vm1, %v955_v57 }
 0x1af   :  { %v1798_v26 = vpop.eup %1797 }
 0x1b0   :  { %v1800_v41 = vpop.eup %1799  ;;  %v1055_v24 = vxor.u32 2147483648, %v1798_v26 }
 0x1b1   :  { %v1052_v32 = vxor.u32 2147483648, %v1800_v41 }
 0x1b2   :  { %v1056_v53 = vsel %vm1054_vm7, %v1055_v24, %v1800_v41 }
 0x1b3   :  { %v1053_v35 = vsel %vm1051_vm9, %v1798_v26, %v1052_v32 }
 0x1b4   :  { %v1057_v29 = vsel %vm1050_vm11, %v1053_v35, %v1056_v53 }
 0x1b5   :  { %v1058_v39 = vsel %vm1048_vm12, nan, %v1057_v29 }
 0x1b6   :  { %1697 = vmatmul.mubr.msk.f32.gmra.mxu1 %vm1074_vm1, %v1058_v39  ;;  %vm1551_vm1 = vcmask 7168  }
 0x224   :  { %v152_v3 = vpop.xlane.xlu1 %151 }
 0x225   :  { %v153_v43 = vmul.f32 0.03125, %v152_v3 }
 0x227   :  { %v154_v62 = vadd.f32 1e-05, %v153_v43 }
 0x229   :  { %1801 = vrsqrt.f32 %v154_v62 }
 0x236   :  { %v1802_v21 = vpop.eup %1801 }
 0x237   :  { %v156_v25 = vmul.f32 %v1802_v21, %v2579_v52 }
 0x239   :  { %v163_v28 = vmul.f32 %v1574_v55, %v156_v25 }
 0x23b   :  { %v170_v22 = vadd.f32 %v1575_v1, %v163_v28 }
 0x23d   :  { %v171_v13 = vmax.f32 %v170_v22, 0.0 }
 0x23e   :  { %v1689_v7 = vpop.f32.mrf.mxu1 }
 0x23f   :  { %v1171_v59 = vadd.f32 %v1689_v7, %v1609_v14 }
 0x240   :  { %v1165_v4 = vpop.f32.mrf.mxu1 }
 0x241   :  { %v1166_v61 = vadd.f32 %v1609_v14, %v1165_v4  ;;  %v1205_v50 = vmax.f32 %v1171_v59, 0.0 }
 0x243   :  { %v1204_v20 = vmax.f32 %v1166_v61, 0.0  ;;  %v1213_v30 = vmul.f32 %v1205_v50, %v171_v13 }
 0x245   :  { %v1212_v40 = vmul.f32 %v1204_v20, %v171_v13 }
 0x247   :  { %1707 = vmatprep.mubr.msk.f32.mxu0 %vm142_vm10, %v1212_v40 }
 0x248   :  { %1708 = vmatmul.mubr.msk.f32.vlgmr.msra.gmra.mxu0 %vm142_vm10, %v1213_v30 }
 0x256   :  { %v1692_v52 = vpop.f32.mrf.mxu1 }
 0x257   :  { %v1181_v9 = vadd.f32 %v1692_v52, %v1609_v14 }
 0x258   :  { %v1175_v16 = vpop.f32.mrf.mxu1 }
 0x259   :  { %v1176_v19 = vadd.f32 %v1609_v14, %v1175_v16  ;;  %v1207_v44 = vmax.f32 %v1181_v9, 0.0 }
 0x25b   :  { %v1206_v47 = vmax.f32 %v1176_v19, 0.0  ;;  %v1215_v56 = vmul.f32 %v1207_v44, %v171_v13 }
 0x25d   :  { %v1214_v0 = vmul.f32 %v1206_v47, %v171_v13 }
 0x25f   :  { %1710 = vmatprep.mubr.msk.f32.mxu0 %vm142_vm10, %v1214_v0 }
 0x260   :  { %1711 = vmatmul.mubr.msk.f32.gmra.mxu0 %vm142_vm10, %v1215_v56 }
 0x266   :  { %v1695_v38 = vpop.f32.mrf.mxu1 }
 0x267   :  { %v1191_v34 = vadd.f32 %v1695_v38, %v1609_v14 }
 0x268   :  { %v1185_v31 = vpop.f32.mrf.mxu1 }
 0x269   :  { %v1186_v18 = vadd.f32 %v1609_v14, %v1185_v31  ;;  %v1209_v12 = vmax.f32 %v1191_v34, 0.0 }
 0x26b   :  { %v1208_v54 = vmax.f32 %v1186_v18, 0.0  ;;  %v1217_v2 = vmul.f32 %v1209_v12, %v171_v13 }
 0x26d   :  { %v1216_v23 = vmul.f32 %v1208_v54, %v171_v13 }
 0x26f   :  { %1713 = vmatprep.mubr.msk.f32.mxu0 %vm142_vm10, %v1216_v23 }
 0x270   :  { %1714 = vmatmul.mubr.msk.f32.gmra.mxu0 %vm142_vm10, %v1217_v2 }
 0x276   :  { %v1698_v37 = vpop.f32.mrf.mxu1 }
 0x277   :  { %v1201_v58 = vadd.f32 %v1698_v37, %v1609_v14 }
 0x278   :  { %v1195_v48 = vpop.f32.mrf.mxu1 }
 0x279   :  { %v1196_v51 = vadd.f32 %v1609_v14, %v1195_v48  ;;  %v1211_v11 = vmax.f32 %v1201_v58, 0.0 }
 0x27b   :  { %v1210_v27 = vmax.f32 %v1196_v51, 0.0  ;;  %v1219_v17 = vmul.f32 %v1211_v11, %v171_v13 }
 0x27d   :  { %v1218_v6 = vmul.f32 %v1210_v27, %v171_v13 }
 0x27f   :  { %1716 = vmatprep.mubr.msk.f32.mxu0 %vm142_vm10, %v1218_v6 }
 0x280   :  { %1717 = vmatmul.mubr.msk.f32.gmra.mxu0 %vm142_vm10, %v1219_v17 }
 0x308   :  { %v1709_v49 = vpop.f32.mrf.mxu0 }
 0x309   :  { %v1327_v36 = vadd.f32 %v1709_v49, %v1618_v60 }
 0x30a   :  { %v1321_v8 = vpop.f32.mrf.mxu0 }
 0x30b   :  { %v1322_v5 = vadd.f32 %v1618_v60, %v1321_v8  ;;  %v1365_v57 = vsel %vm142_vm10, %v1327_v36, 0.0 }
 0x30c   :  { %1366 = vadd.xlane.f32.xlu0 %v1365_v57 }
 0x30d   :  { %v1362_v45 = vsel %vm142_vm10, %v1322_v5, 0.0 }
 0x310   :  { %1363 = vadd.xlane.f32.xlu0 %v1362_v45 }
 0x320   :  { %v1712_v10 = vpop.f32.mrf.mxu0 }
 0x321   :  { %v1337_v33 = vadd.f32 %v1712_v10, %v1618_v60 }
 0x322   :  { %v1331_v26 = vpop.f32.mrf.mxu0 }
 0x323   :  { %v1332_v41 = vadd.f32 %v1618_v60, %v1331_v26  ;;  %v1371_v24 = vsel %vm142_vm10, %v1337_v33, 0.0 }
 0x324   :  { %1372 = vadd.xlane.f32.xlu0 %v1371_v24 }
 0x325   :  { %v1368_v32 = vsel %vm142_vm10, %v1332_v41, 0.0 }
 0x326   :  { %1369 = vadd.xlane.f32.xlu1 %v1368_v32 }
 0x330   :  { %v1715_v53 = vpop.f32.mrf.mxu0 }
 0x331   :  { %v1347_v35 = vadd.f32 %v1715_v53, %v1618_v60 }
 0x332   :  { %v1341_v29 = vpop.f32.mrf.mxu0 }
 0x333   :  { %v1342_v39 = vadd.f32 %v1618_v60, %v1341_v29  ;;  %v1377_v42 = vsel %vm142_vm10, %v1347_v35, 0.0 }
 0x334   :  { %1378 = vadd.xlane.f32.xlu0 %v1377_v42 }
 0x335   :  { %v1374_v63 = vsel %vm142_vm10, %v1342_v39, 0.0 }
 0x336   :  { %1375 = vadd.xlane.f32.xlu1 %v1374_v63 }
 0x340   :  { %v1718_v46 = vpop.f32.mrf.mxu0 }
 0x341   :  { %v1357_v15 = vadd.f32 %v1718_v46, %v1618_v60 }
 0x342   :  { %v1351_v3 = vpop.f32.mrf.mxu0 }
 0x343   :  { %v1352_v43 = vadd.f32 %v1618_v60, %v1351_v3  ;;  %v1383_v62 = vsel %vm142_vm10, %v1357_v15, 0.0 }
 0x344   :  { %1384 = vadd.xlane.f32.xlu0 %v1383_v62 }
 0x345   :  { %v1380_v21 = vsel %vm142_vm10, %v1352_v43, 0.0 }
 0x346   :  { %1381 = vadd.xlane.f32.xlu1 %v1380_v21 }
 0x395   :  { %v1367_v55 = vpop.xlane.xlu0 %1366 }
 0x396   :  { %v1387_v25 = vmul.f32 0.03125, %v1367_v55 }
 0x398   :  { %v1395_v28 = vsub.f32 %v1327_v36, %v1387_v25 }
 0x399   :  { %v1364_v1 = vpop.xlane.xlu0 %1363 }
 0x39a   :  { %v1386_v14 = vmul.f32 0.03125, %v1364_v1  ;;  %v1403_v7 = vmul.f32 %v1395_v28, %v1395_v28 }
 0x39c   :  { %v1394_v22 = vsub.f32 %v1322_v5, %v1386_v14  ;;  %v1413_v59 = vsel %vm142_vm10, %v1403_v7, 0.0 }
 0x39d   :  { %1414 = vadd.xlane.f32.xlu0 %v1413_v59 }
 0x39e   :  { %v1402_v4 = vmul.f32 %v1394_v22, %v1394_v22 }
 0x3a0   :  { %v1410_v61 = vsel %vm142_vm10, %v1402_v4, 0.0 }
 0x3a1   :  { %1411 = vadd.xlane.f32.xlu1 %v1410_v61 }
 0x3ad   :  { %v1373_v50 = vpop.xlane.xlu0 %1372 }
 0x3ae   :  { %v1389_v13 = vmul.f32 0.03125, %v1373_v50 }
 0x3af   :  { %v1370_v20 = vpop.xlane.xlu1 %1369 }
 0x3b0   :  { %v2657_v40 = vsub.f32 %v1337_v33, %v1389_v13  ;;  %v1388_v30 = vmul.f32 0.03125, %v1370_v20  ;;  %v2690_v33 = vld [vmem:[%s2757_s11] ss:$0 sm:$0xff] }
 0x3b2   :  { %v2659_v52 = vsub.f32 %v1332_v41, %v1388_v30  ;;  %v1405_v9 = vmul.f32 %v2657_v40, %v2657_v40  ;;  %v2695_v41 = vld [vmem:[%s2758_s12] ss:$0 sm:$0xff] }
 0x3b4   :  { %v1419_v16 = vsel %vm142_vm10, %v1405_v9, 0.0  ;;  %v1404_v19 = vmul.f32 %v2659_v52, %v2659_v52 }
 0x3b5   :  { %1420 = vadd.xlane.f32.xlu0 %v1419_v16 }
 0x3b6   :  { %v1416_v44 = vsel %vm142_vm10, %v1404_v19, 0.0 }
 0x3b7   :  { %1417 = vadd.xlane.f32.xlu1 %v1416_v44 }
 0x3bd   :  { %v1379_v47 = vpop.xlane.xlu0 %1378 }
 0x3be   :  { %v1391_v0 = vmul.f32 0.03125, %v1379_v47 }
 0x3bf   :  { %v1376_v56 = vpop.xlane.xlu1 %1375 }
 0x3c0   :  { %v2667_v38 = vsub.f32 %v1347_v35, %v1391_v0  ;;  %v1390_v34 = vmul.f32 0.03125, %v1376_v56 }
 0x3c2   :  { %v2669_v31 = vsub.f32 %v1342_v39, %v1390_v34  ;;  %v1407_v18 = vmul.f32 %v2667_v38, %v2667_v38  ;;  %v2702_v39 = vld [vmem:[%s2759_s13] ss:$0 sm:$0xff] }
 0x3c4   :  { %v1425_v12 = vsel %vm142_vm10, %v1407_v18, 0.0  ;;  %v1406_v54 = vmul.f32 %v2669_v31, %v2669_v31 }
 0x3c5   :  { %1426 = vadd.xlane.f32.xlu0 %v1425_v12 }
 0x3c6   :  { %v1422_v23 = vsel %vm142_vm10, %v1406_v54, 0.0 }
 0x3c7   :  { %1423 = vadd.xlane.f32.xlu1 %v1422_v23 }
 0x3cd   :  { %v1385_v2 = vpop.xlane.xlu0 %1384 }
 0x3ce   :  { %v1393_v37 = vmul.f32 0.03125, %v1385_v2 }
 0x3cf   :  { %v1382_v58 = vpop.xlane.xlu1 %1381 }
 0x3d0   :  { %v2677_v48 = vsub.f32 %v1357_v15, %v1393_v37  ;;  %v1392_v51 = vmul.f32 0.03125, %v1382_v58 }
 0x3d2   :  { %v2679_v11 = vsub.f32 %v1352_v43, %v1392_v51  ;;  %v1409_v27 = vmul.f32 %v2677_v48, %v2677_v48 }
 0x3d4   :  { %v1431_v6 = vsel %vm142_vm10, %v1409_v27, 0.0  ;;  %v1408_v17 = vmul.f32 %v2679_v11, %v2679_v11 }
 0x3d5   :  { %1432 = vadd.xlane.f32.xlu0 %v1431_v6 }
 0x3d6   :  { %v1428_v60 = vsel %vm142_vm10, %v1408_v17, 0.0 }
 0x3d7   :  { %1429 = vadd.xlane.f32.xlu1 %v1428_v60 }
 0x426   :  { %v1415_v49 = vpop.xlane.xlu0 %1414 }
 0x427   :  { %v1435_v36 = vmul.f32 0.03125, %v1415_v49 }
 0x429   :  { %v1443_v8 = vadd.f32 1e-05, %v1435_v36 }
 0x42a   :  { %v1412_v5 = vpop.xlane.xlu1 %1411 }
 0x42b   :  { %1803 = vrsqrt.f32 %v1443_v8  ;;  %v1434_v57 = vmul.f32 0.03125, %v1412_v5 }
 0x42d   :  { %v1442_v45 = vadd.f32 1e-05, %v1434_v57 }
 0x42f   :  { %1805 = vrsqrt.f32 %v1442_v45 }
 0x438   :  { %v1804_v10 = vpop.eup %1803 }
 0x439   :  { %v1459_v26 = vmul.f32 %v1804_v10, %v1395_v28 }
 0x43b   :  { %v1473_v24 = vmul.f32 %v2690_v33, %v1459_v26 }
 0x43c   :  { %v1806_v32 = vpop.eup %1805 }
 0x43d   :  { %v1487_v53 = vadd.f32 %v2695_v41, %v1473_v24  ;;  %v1458_v35 = vmul.f32 %v1806_v32, %v1394_v22 }
 0x43e   :  { %v1421_v29 = vpop.xlane.xlu0 %1420 }
 0x43f   :  { %v1437_v42 = vmul.f32 0.03125, %v1421_v29  ;;  %v1495_v63 = vmax.f32 %v1487_v53, 0.0  ;;  %v1472_v46 = vmul.f32 %v2690_v33, %v1458_v35 }
 0x440   :  { %v1418_v15 = vpop.xlane.xlu1 %1417 }
 0x441   :  { %v1445_v3 = vadd.f32 1e-05, %v1437_v42  ;;  %v1436_v43 = vmul.f32 0.03125, %v1418_v15  ;;  %v1510_v62 = vmul.f32 %v2702_v39, %v1495_v63  ;;  %v1486_v21 = vadd.f32 %v2695_v41, %v1472_v46 }
 0x443   :  { %1807 = vrsqrt.f32 %v1445_v3  ;;  %v1444_v55 = vadd.f32 1e-05, %v1436_v43  ;;  %v1520_v25 = vsel %vm142_vm10, %v1510_v62, 0.0  ;;  %v1494_v28 = vmax.f32 %v1486_v21, 0.0 }
 0x444   :  { %1521 = vadd.xlane.f32.xlu0 %v1520_v25 }
 0x445   :  { %1809 = vrsqrt.f32 %v1444_v55  ;;  %v1509_v1 = vmul.f32 %v2702_v39, %v1494_v28 }
 0x447   :  { %v1517_v14 = vsel %vm142_vm10, %v1509_v1, 0.0 }
 0x448   :  { %1518 = vadd.xlane.f32.xlu1 %v1517_v14 }
 0x44e   :  { %v1427_v7 = vpop.xlane.xlu0 %1426 }
 0x44f   :  { %v1439_v22 = vmul.f32 0.03125, %v1427_v7 }
 0x450   :  { %v1808_v59 = vpop.eup %1807  ;;  %v1424_v4 = vpop.xlane.xlu1 %1423 }
 0x451   :  { %v1447_v61 = vadd.f32 1e-05, %v1439_v22  ;;  %v1438_v50 = vmul.f32 0.03125, %v1424_v4  ;;  %v1461_v13 = vmul.f32 %v1808_v59, %v2657_v40 }
 0x452   :  { %v1810_v20 = vpop.eup %1809 }
 0x453   :  { %1811 = vrsqrt.f32 %v1447_v61  ;;  %v1446_v30 = vadd.f32 1e-05, %v1438_v50  ;;  %v1475_v9 = vmul.f32 %v2690_v33, %v1461_v13  ;;  %v1460_v16 = vmul.f32 %v1810_v20, %v2659_v52 }
 0x455   :  { %1813 = vrsqrt.f32 %v1446_v30  ;;  %v1489_v19 = vadd.f32 %v2695_v41, %v1475_v9  ;;  %v1474_v44 = vmul.f32 %v2690_v33, %v1460_v16 }
 0x457   :  { %v1497_v47 = vmax.f32 %v1489_v19, 0.0  ;;  %v1488_v0 = vadd.f32 %v2695_v41, %v1474_v44 }
 0x459   :  { %v1512_v56 = vmul.f32 %v2702_v39, %v1497_v47  ;;  %v1496_v34 = vmax.f32 %v1488_v0, 0.0 }
 0x45b   :  { %v1526_v40 = vsel %vm142_vm10, %v1512_v56, 0.0  ;;  %v1511_v18 = vmul.f32 %v2702_v39, %v1496_v34 }
 0x45c   :  { %1527 = vadd.xlane.f32.xlu0 %v1526_v40 }
 0x45d   :  { %v1523_v12 = vsel %vm142_vm10, %v1511_v18, 0.0 }
 0x45e   :  { %v1433_v54 = vpop.xlane.xlu0 %1432  ;;  %1524 = vadd.xlane.f32.xlu1 %v1523_v12 }
 0x45f   :  { %v1441_v52 = vmul.f32 0.03125, %v1433_v54 }
 0x460   :  { %v1812_v23 = vpop.eup %1811  ;;  %v1430_v2 = vpop.xlane.xlu1 %1429 }
 0x461   :  { %v1449_v37 = vadd.f32 1e-05, %v1441_v52  ;;  %v1440_v58 = vmul.f32 0.03125, %v1430_v2  ;;  %v1463_v51 = vmul.f32 %v1812_v23, %v2667_v38 }
 0x462   :  { %v1814_v27 = vpop.eup %1813 }
 0x463   :  { %1815 = vrsqrt.f32 %v1449_v37  ;;  %v1448_v6 = vadd.f32 1e-05, %v1440_v58  ;;  %v1477_v17 = vmul.f32 %v2690_v33, %v1463_v51  ;;  %v1462_v60 = vmul.f32 %v1814_v27, %v2669_v31 }
 0x465   :  { %1817 = vrsqrt.f32 %v1448_v6  ;;  %v1491_v49 = vadd.f32 %v2695_v41, %v1477_v17  ;;  %v1476_v36 = vmul.f32 %v2690_v33, %v1462_v60 }
 0x467   :  { %v1499_v8 = vmax.f32 %v1491_v49, 0.0  ;;  %v1490_v5 = vadd.f32 %v2695_v41, %v1476_v36 }
 0x469   :  { %v1514_v57 = vmul.f32 %v2702_v39, %v1499_v8  ;;  %v1498_v45 = vmax.f32 %v1490_v5, 0.0 }
 0x46b   :  { %v1532_v38 = vsel %vm142_vm10, %v1514_v57, 0.0  ;;  %v1513_v10 = vmul.f32 %v2702_v39, %v1498_v45 }
 0x46c   :  { %1533 = vadd.xlane.f32.xlu0 %v1532_v38 }
 0x46d   :  { %v1529_v26 = vsel %vm142_vm10, %v1513_v10, 0.0 }
 0x46e   :  { %1530 = vadd.xlane.f32.xlu1 %v1529_v26 }
 0x470   :  { %v1816_v31 = vpop.eup %1815 }
 0x471   :  { %v1465_v24 = vmul.f32 %v1816_v31, %v2677_v48 }
 0x472   :  { %v1818_v32 = vpop.eup %1817 }
 0x473   :  { %v1479_v53 = vmul.f32 %v2690_v33, %v1465_v24  ;;  %v1464_v35 = vmul.f32 %v1818_v32, %v2679_v11 }
 0x475   :  { %v1493_v29 = vadd.f32 %v2695_v41, %v1479_v53  ;;  %v1478_v42 = vmul.f32 %v2690_v33, %v1464_v35  ;;  %v1542_v33 = vstv %s2760_s14 }
 0x477   :  { %v1501_v63 = vmax.f32 %v1493_v29, 0.0  ;;  %v1492_v46 = vadd.f32 %v2695_v41, %v1478_v42 }
 0x479   :  { %v1516_v15 = vmul.f32 %v2702_v39, %v1501_v63  ;;  %v1500_v3 = vmax.f32 %v1492_v46, 0.0 }
 0x47b   :  { %v1538_v43 = vsel %vm142_vm10, %v1516_v15, 0.0  ;;  %v1515_v62 = vmul.f32 %v2702_v39, %v1500_v3 }
 0x47c   :  { %1539 = vadd.xlane.f32.xlu0 %v1538_v43 }
 0x47d   :  { %v1535_v48 = vsel %vm142_vm10, %v1515_v62, 0.0  ;;  %vm1557_vm10 = vcmask 31744  }
 0x47e   :  { %1536 = vadd.xlane.f32.xlu1 %v1535_v48 }
 0x4cd   :  { %v1522_v11 = vpop.xlane.xlu0 %1521 }
 0x4ce   :  { %v1544_v1 = vadd.f32 %v1542_v33, %v1522_v11 }
 0x4d1   :  { %v1519_v21 = vpop.xlane.xlu1 %1518 }
 0x4d2   :  { %v1543_v41 = vadd.f32 %v1542_v33, %v1519_v21 }
 0x4d4   :  { %v1552_v39 = vsel %vm1551_vm1, %v1543_v41, %v1544_v1 }
 0x4e5   :  { %v1528_v25 = vpop.xlane.xlu0 %1527 }
 0x4e6   :  { %v1546_v4 = vadd.f32 %v1542_v33, %v1528_v25 }
 0x4e7   :  { %v1525_v55 = vpop.xlane.xlu1 %1524 }
 0x4e8   :  { %v1545_v28 = vadd.f32 %v1542_v33, %v1525_v55 }
 0x4ea   :  { %v1554_v22 = vsel %vm1553_vm6, %v1552_v39, %v1545_v28 }
 0x4eb   :  { %v1556_v61 = vsel %vm1555_vm8, %v1554_v22, %v1546_v4 }
 0x4f5   :  { %v1534_v7 = vpop.xlane.xlu0 %1533 }
 0x4f6   :  { %v1548_v20 = vadd.f32 %v1542_v33, %v1534_v7 }
 0x4f7   :  { %v1531_v14 = vpop.xlane.xlu1 %1530 }
 0x4f8   :  { %v1547_v59 = vadd.f32 %v1542_v33, %v1531_v14 }
 0x4fa   :  { %v1558_v50 = vsel %vm1557_vm10, %v1556_v61, %v1547_v59 }
 0x4fb   :  { %v1560_v19 = vsel %vm1559_vm13, %v1558_v50, %v1548_v20 }
 0x505   :  { %v1540_v13 = vpop.xlane.xlu0 %1539 }
 0x506   :  { %v1550_v16 = vadd.f32 %v1542_v33, %v1540_v13 }
 0x507   :  { %v1537_v30 = vpop.xlane.xlu1 %1536 }
 0x508   :  { %v1549_v9 = vadd.f32 %v1542_v33, %v1537_v30 }
 0x50a   :  { %v1562_v44 = vsel %vm1561_vm14, %v1560_v19, %v1549_v9 }
 0x50b   :  { %v1564_v47 = vsel %vm1563_vm15, %v1562_v44, %v1550_v16 }
 0x50c   :  { %1566 = vst.msk [vmem:[%s2761_s15] sm:$0xff] %vm1565_vm0, %v1564_v47 }

</bundles_post_ra>
